<compile_context>
chip_gen: v6e
topology: v6e:2x2x1
jax: 0.10.0
libtpu: 0.0.40
codegen_flags: <defaults>
</compile_context>

<pallas_src>
import functools

import numpy as np
import jax
import jax.numpy as jnp
from jax.experimental import pallas as pl
from jax.experimental.pallas import tpu as pltpu


# -----------------------------------------------------------------------------
# Fused kernel: front + q_net + argmax for one batch tile
# -----------------------------------------------------------------------------
def _fused_policy_kernel(x_ref, w1_ref, b1_ref, w2_ref, b2_ref,
                         wfc_ref, bfc_ref, wq_ref, bq_ref, a_ref,
                         *, num_actions, op_dtype):
    # x_ref: (8, TB, 128), lane = (h % 2)*64 + w*4 + c  (8 "h-pair" slabs per image)
    xr = [x_ref[hp] for hp in range(8)]                       # each (TB, 128)

    # conv1 (k=4, s=2) + ReLU: one matmul per output row against banded weights.
    # A1_p = rows 2p..2p+3 of the image = concat of h-pairs p and p+1 (128-aligned).
    h1 = []
    for p in range(7):
        a1 = jnp.concatenate([xr[p], xr[p + 1]], axis=-1)     # (TB, 256)
        acc = jnp.dot(a1, w1_ref[...], preferred_element_type=jnp.float32)
        h1.append(jnp.maximum(acc + b1_ref[...], 0.0).astype(op_dtype))   # (TB, 128)

    # conv2 (k=3, s=1) + ReLU: output row r uses conv1 rows r..r+2.
    h2 = []
    for r in range(5):
        a2 = jnp.concatenate([h1[r], h1[r + 1], h1[r + 2]], axis=-1)      # (TB, 384)
        acc = jnp.dot(a2, w2_ref[...], preferred_element_type=jnp.float32)
        h2.append(jnp.maximum(acc + b2_ref[...], 0.0).astype(op_dtype))   # (TB, 256)

    # flatten (lane concat at 256-aligned offsets) + fc + ReLU
    xfc = jnp.concatenate(h2, axis=-1)                                    # (TB, 1280)
    acc = jnp.dot(xfc, wfc_ref[...], preferred_element_type=jnp.float32)
    emb = jnp.maximum(acc + bfc_ref[...], 0.0)                            # (TB, 128) f32

    # q head (kept f32) + greedy argmax (first max, matching torch.argmax)
    q = jnp.dot(emb, wq_ref[...], preferred_element_type=jnp.float32) + bq_ref[...]
    m = jnp.max(q, axis=-1, keepdims=True)
    idx = jax.lax.broadcasted_iota(jnp.int32, q.shape, 1)
    masked = jnp.where(q == m, idx, jnp.int32(num_actions))
    a_ref[...] = jnp.min(masked, axis=-1, keepdims=True).astype(jnp.int32)


# -----------------------------------------------------------------------------
# Parameters: logical (PyTorch-equivalent) weights + host-side packing
# -----------------------------------------------------------------------------
def init_params(key, num_actions=6):
    ks = jax.random.split(key, 8)
    s = 0.05
    return {
        "c1_w": s * jax.random.normal(ks[0], (4, 4, 4, 16), jnp.float32),   # (kh, kw, cin, cout)
        "c1_b": s * jax.random.normal(ks[1], (16,), jnp.float32),
        "c2_w": s * jax.random.normal(ks[2], (3, 3, 16, 32), jnp.float32),
        "c2_b": s * jax.random.normal(ks[3], (32,), jnp.float32),
        "fc_w": s * jax.random.normal(ks[4], (800, 128), jnp.float32),      # flatten order (h, w, c)
        "fc_b": s * jax.random.normal(ks[5], (128,), jnp.float32),
        "q_w":  s * jax.random.normal(ks[6], (128, num_actions), jnp.float32),
        "q_b":  s * jax.random.normal(ks[7], (num_actions,), jnp.float32),
    }


def pack_params(params, op_dtype=jnp.bfloat16):
    """Pack dense conv/fc weights into the banded, lane-padded layouts the fused
    kernel consumes. Pure host-side layout plumbing; numerics are unchanged."""
    c1_w = np.asarray(params["c1_w"], np.float32)               # (4, 4, 4, 16)
    c2_w = np.asarray(params["c2_w"], np.float32)               # (3, 3, 16, 32)
    fc_w = np.asarray(params["fc_w"], np.float32).reshape(5, 5, 32, 128)

    # conv1: row index = (i//2)*128 + (i%2)*64 + w*4 + c ; col index = q*16 + o (pad to 128)
    w1 = np.zeros((256, 128), np.float32)
    for i in range(4):
        for j in range(4):
            for q in range(7):
                w_in = 2 * q + j
                r0 = (i // 2) * 128 + (i % 2) * 64 + w_in * 4
                w1[r0:r0 + 4, q * 16:(q + 1) * 16] = c1_w[i, j]
    b1 = np.zeros((1, 128), np.float32)
    b1[0, :112] = np.tile(np.asarray(params["c1_b"], np.float32), 7)

    # conv2: row index = i*128 + q*16 + o ; col index = s*32 + m (pad to 256)
    w2 = np.zeros((384, 256), np.float32)
    for i in range(3):
        for j in range(3):
            for s in range(5):
                q_in = s + j
                r0 = i * 128 + q_in * 16
                w2[r0:r0 + 16, s * 32:(s + 1) * 32] = c2_w[i, j]
    b2 = np.zeros((1, 256), np.float32)
    b2[0, :160] = np.tile(np.asarray(params["c2_b"], np.float32), 5)

    # fc: row index = r*256 + s*32 + m  <->  logical flatten index r*160 + s*32 + m
    wfc = np.zeros((1280, 128), np.float32)
    for r in range(5):
        for s in range(5):
            r0 = r * 256 + s * 32
            wfc[r0:r0 + 32, :] = fc_w[r, s]
    bfc = np.asarray(params["fc_b"], np.float32).reshape(1, 128)

    return {
        "w1": jnp.asarray(w1, op_dtype), "b1": jnp.asarray(b1, jnp.float32),
        "w2": jnp.asarray(w2, op_dtype), "b2": jnp.asarray(b2, jnp.float32),
        "wfc": jnp.asarray(wfc, op_dtype), "bfc": jnp.asarray(bfc, jnp.float32),
        # q-head stays f32 so the argmax is not perturbed by the bf16 path
        "wq": jnp.asarray(params["q_w"], jnp.float32),
        "bq": jnp.asarray(params["q_b"], jnp.float32).reshape(1, -1),
    }


def _round_up(n, m):
    return ((n + m - 1) // m) * m


# -----------------------------------------------------------------------------
# QPolicyWrapperWithFront.forward
# -----------------------------------------------------------------------------
@jax.jit
def policy_infer(packed, obs_nchw):
    B = obs_nchw.shape[0]
    op_dtype = packed["w1"].dtype
    num_actions = packed["wq"].shape[1]

    # Batch tile: multiple of 8, capped at 128 rows (fits any generation's VMEM
    # with large headroom; re-sweep upward if desired on v5e/v6e).
    tb = min(128, _round_up(B, 8))
    b_pad = _round_up(B, tb)

    obs = obs_nchw.astype(jnp.float32)
    if b_pad != B:
        obs = jnp.pad(obs, ((0, b_pad - B), (0, 0), (0, 0), (0, 0)))

    # Layout plumbing (one fused XLA op on the tiny input):
    # NCHW -> (h_pair, B, 128) with lane = (h % 2)*64 + w*4 + c
    x = jnp.transpose(obs, (2, 0, 3, 1))                  # (16, B, 16, 4)
    x = x.reshape(8, 2, b_pad, 64)
    x = jnp.transpose(x, (0, 2, 1, 3)).reshape(8, b_pad, 128).astype(op_dtype)

    nb = b_pad // tb
    kernel = functools.partial(_fused_policy_kernel,
                               num_actions=num_actions, op_dtype=op_dtype)

    flops = 2 * b_pad * (7 * 256 * 128 + 5 * 384 * 256 + 1280 * 128 + 128 * num_actions)
    bytes_accessed = (x.size * x.dtype.itemsize
                      + sum(int(v.size) * v.dtype.itemsize for v in packed.values())
                      + b_pad * 4)

    actions = pl.pallas_call(
        kernel,
        out_shape=jax.ShapeDtypeStruct((b_pad, 1), jnp.int32),
        grid=(nb,),
        in_specs=[
            pl.BlockSpec((8, tb, 128), lambda b: (0, b, 0)),        # obs tile
            pl.BlockSpec((256, 128), lambda b: (0, 0)),             # conv1 banded W
            pl.BlockSpec((1, 128), lambda b: (0, 0)),               # conv1 bias
            pl.BlockSpec((384, 256), lambda b: (0, 0)),             # conv2 banded W
            pl.BlockSpec((1, 256), lambda b: (0, 0)),               # conv2 bias
            pl.BlockSpec((1280, 128), lambda b: (0, 0)),            # fc W (padded K)
            pl.BlockSpec((1, 128), lambda b: (0, 0)),               # fc bias
            pl.BlockSpec((128, num_actions), lambda b: (0, 0)),     # q W (f32)
            pl.BlockSpec((1, num_actions), lambda b: (0, 0)),       # q bias
        ],
        out_specs=pl.BlockSpec((tb, 1), lambda b: (b, 0)),
        compiler_params=pltpu.CompilerParams(
            dimension_semantics=("parallel",)),
        cost_estimate=pl.CostEstimate(flops=flops, transcendentals=0,
                                      bytes_accessed=bytes_accessed),
    )(x, packed["w1"], packed["b1"], packed["w2"], packed["b2"],
      packed["wfc"], packed["bfc"], packed["wq"], packed["bq"])

    return actions[:B]


if __name__ == "__main__":
    key = jax.random.PRNGKey(0)
    pkey, okey = jax.random.split(key)

    params = init_params(pkey)            # logical (PyTorch-equivalent) weights
    packed = pack_params(params)          # one-time banded/padded packing (host side)

    # obs: NCHW, batch=2, channels=4, spatial=16x16 (small Atari-like frame stack)
    obs = jax.random.normal(okey, (2, 4, 16, 16), jnp.float32)

    actions = policy_infer(packed, obs)
    jax.block_until_ready(actions)
    assert actions.shape == (2, 1) and actions.dtype == jnp.int32
    print("KERNEL_OK")
</pallas_src>

<mosaic_0001>
module attributes {stable_mosaic.version = 11 : i64} {
  func.func @_fused_policy_kernel(%arg0: i32, %arg1: memref<8x8x128xbf16, #tpu.memory_space<vmem>>, %arg2: memref<256x128xbf16, #tpu.memory_space<vmem>>, %arg3: memref<1x128xf32, #tpu.memory_space<vmem>>, %arg4: memref<384x256xbf16, #tpu.memory_space<vmem>>, %arg5: memref<1x256xf32, #tpu.memory_space<vmem>>, %arg6: memref<1280x128xbf16, #tpu.memory_space<vmem>>, %arg7: memref<1x128xf32, #tpu.memory_space<vmem>>, %arg8: memref<128x6xf32, #tpu.memory_space<vmem>>, %arg9: memref<1x6xf32, #tpu.memory_space<vmem>>, %arg10: memref<8x1xi32, #tpu.memory_space<vmem>>) attributes {dimension_semantics = [#tpu.dimension_semantics<parallel>], iteration_bounds = array<i64: 1>, scalar_prefetch = 0 : i64, scratch_operands = 0 : i64, tpu.core_type = #tpu.core_type<tc>, window_params = [{transform_indices = @transform_0, window_bounds = array<i64: 8, 8, 128>}, {pipeline_mode = #tpu.pipeline_mode<synchronous>, transform_indices = @transform_1, window_bounds = array<i64: 256, 128>}, {pipeline_mode = #tpu.pipeline_mode<synchronous>, transform_indices = @transform_2, window_bounds = array<i64: 1, 128>}, {pipeline_mode = #tpu.pipeline_mode<synchronous>, transform_indices = @transform_3, window_bounds = array<i64: 384, 256>}, {pipeline_mode = #tpu.pipeline_mode<synchronous>, transform_indices = @transform_4, window_bounds = array<i64: 1, 256>}, {pipeline_mode = #tpu.pipeline_mode<synchronous>, transform_indices = @transform_5, window_bounds = array<i64: 1280, 128>}, {pipeline_mode = #tpu.pipeline_mode<synchronous>, transform_indices = @transform_6, window_bounds = array<i64: 1, 128>}, {pipeline_mode = #tpu.pipeline_mode<synchronous>, transform_indices = @transform_7, window_bounds = array<i64: 128, 6>}, {pipeline_mode = #tpu.pipeline_mode<synchronous>, transform_indices = @transform_8, window_bounds = array<i64: 1, 6>}, {transform_indices = @transform_9, window_bounds = array<i64: 8, 1>}]} {
    %c0 = arith.constant 0 : index
    %c0_0 = arith.constant 0 : index
    %c0_1 = arith.constant 0 : index
    %0 = vector.load %arg1[%c0, %c0_0, %c0_1] : memref<8x8x128xbf16, #tpu.memory_space<vmem>>, vector<1x8x128xbf16>
    %1 = vector.shape_cast %0 : vector<1x8x128xbf16> to vector<8x128xbf16>
    %c1 = arith.constant 1 : index
    %c0_2 = arith.constant 0 : index
    %c0_3 = arith.constant 0 : index
    %2 = vector.load %arg1[%c1, %c0_2, %c0_3] : memref<8x8x128xbf16, #tpu.memory_space<vmem>>, vector<1x8x128xbf16>
    %3 = vector.shape_cast %2 : vector<1x8x128xbf16> to vector<8x128xbf16>
    %c2 = arith.constant 2 : index
    %c0_4 = arith.constant 0 : index
    %c0_5 = arith.constant 0 : index
    %4 = vector.load %arg1[%c2, %c0_4, %c0_5] : memref<8x8x128xbf16, #tpu.memory_space<vmem>>, vector<1x8x128xbf16>
    %5 = vector.shape_cast %4 : vector<1x8x128xbf16> to vector<8x128xbf16>
    %c3 = arith.constant 3 : index
    %c0_6 = arith.constant 0 : index
    %c0_7 = arith.constant 0 : index
    %6 = vector.load %arg1[%c3, %c0_6, %c0_7] : memref<8x8x128xbf16, #tpu.memory_space<vmem>>, vector<1x8x128xbf16>
    %7 = vector.shape_cast %6 : vector<1x8x128xbf16> to vector<8x128xbf16>
    %c4 = arith.constant 4 : index
    %c0_8 = arith.constant 0 : index
    %c0_9 = arith.constant 0 : index
    %8 = vector.load %arg1[%c4, %c0_8, %c0_9] : memref<8x8x128xbf16, #tpu.memory_space<vmem>>, vector<1x8x128xbf16>
    %9 = vector.shape_cast %8 : vector<1x8x128xbf16> to vector<8x128xbf16>
    %c5 = arith.constant 5 : index
    %c0_10 = arith.constant 0 : index
    %c0_11 = arith.constant 0 : index
    %10 = vector.load %arg1[%c5, %c0_10, %c0_11] : memref<8x8x128xbf16, #tpu.memory_space<vmem>>, vector<1x8x128xbf16>
    %11 = vector.shape_cast %10 : vector<1x8x128xbf16> to vector<8x128xbf16>
    %c6 = arith.constant 6 : index
    %c0_12 = arith.constant 0 : index
    %c0_13 = arith.constant 0 : index
    %12 = vector.load %arg1[%c6, %c0_12, %c0_13] : memref<8x8x128xbf16, #tpu.memory_space<vmem>>, vector<1x8x128xbf16>
    %13 = vector.shape_cast %12 : vector<1x8x128xbf16> to vector<8x128xbf16>
    %c7 = arith.constant 7 : index
    %c0_14 = arith.constant 0 : index
    %c0_15 = arith.constant 0 : index
    %14 = vector.load %arg1[%c7, %c0_14, %c0_15] : memref<8x8x128xbf16, #tpu.memory_space<vmem>>, vector<1x8x128xbf16>
    %15 = vector.shape_cast %14 : vector<1x8x128xbf16> to vector<8x128xbf16>
    %16 = tpu.concatenate %1, %3 in 1 : vector<8x128xbf16>, vector<8x128xbf16> -> vector<8x256xbf16>
    %c0_16 = arith.constant 0 : index
    %c0_17 = arith.constant 0 : index
    %17 = vector.load %arg2[%c0_16, %c0_17] : memref<256x128xbf16, #tpu.memory_space<vmem>>, vector<256x128xbf16>
    %cst = arith.constant dense<0.000000e+00> : vector<8x128xf32>
    %18 = tpu.matmul %16, %17, %cst {dimension_numbers = #tpu.dot_dimension_numbers<[1], [0], [0], [1], [0, 0, 1, 1], [], []>} : vector<8x256xbf16>, vector<256x128xbf16>, vector<8x128xf32> -> vector<8x128xf32>
    %c0_18 = arith.constant 0 : index
    %c0_19 = arith.constant 0 : index
    %19 = vector.load %arg3[%c0_18, %c0_19] : memref<1x128xf32, #tpu.memory_space<vmem>>, vector<1x128xf32>
    %20 = vector.broadcast %19 : vector<1x128xf32> to vector<8x128xf32>
    %21 = arith.addf %18, %20 : vector<8x128xf32>
    %cst_20 = arith.constant 0.000000e+00 : f32
    %22 = vector.broadcast %cst_20 : f32 to vector<8x128xf32>
    %23 = arith.maximumf %21, %22 : vector<8x128xf32>
    %24 = arith.truncf %23 : vector<8x128xf32> to vector<8x128xbf16>
    %25 = tpu.concatenate %3, %5 in 1 : vector<8x128xbf16>, vector<8x128xbf16> -> vector<8x256xbf16>
    %c0_21 = arith.constant 0 : index
    %c0_22 = arith.constant 0 : index
    %26 = vector.load %arg2[%c0_21, %c0_22] : memref<256x128xbf16, #tpu.memory_space<vmem>>, vector<256x128xbf16>
    %cst_23 = arith.constant dense<0.000000e+00> : vector<8x128xf32>
    %27 = tpu.matmul %25, %26, %cst_23 {dimension_numbers = #tpu.dot_dimension_numbers<[1], [0], [0], [1], [0, 0, 1, 1], [], []>} : vector<8x256xbf16>, vector<256x128xbf16>, vector<8x128xf32> -> vector<8x128xf32>
    %c0_24 = arith.constant 0 : index
    %c0_25 = arith.constant 0 : index
    %28 = vector.load %arg3[%c0_24, %c0_25] : memref<1x128xf32, #tpu.memory_space<vmem>>, vector<1x128xf32>
    %29 = vector.broadcast %28 : vector<1x128xf32> to vector<8x128xf32>
    %30 = arith.addf %27, %29 : vector<8x128xf32>
    %cst_26 = arith.constant 0.000000e+00 : f32
    %31 = vector.broadcast %cst_26 : f32 to vector<8x128xf32>
    %32 = arith.maximumf %30, %31 : vector<8x128xf32>
    %33 = arith.truncf %32 : vector<8x128xf32> to vector<8x128xbf16>
    %34 = tpu.concatenate %5, %7 in 1 : vector<8x128xbf16>, vector<8x128xbf16> -> vector<8x256xbf16>
    %c0_27 = arith.constant 0 : index
    %c0_28 = arith.constant 0 : index
    %35 = vector.load %arg2[%c0_27, %c0_28] : memref<256x128xbf16, #tpu.memory_space<vmem>>, vector<256x128xbf16>
    %cst_29 = arith.constant dense<0.000000e+00> : vector<8x128xf32>
    %36 = tpu.matmul %34, %35, %cst_29 {dimension_numbers = #tpu.dot_dimension_numbers<[1], [0], [0], [1], [0, 0, 1, 1], [], []>} : vector<8x256xbf16>, vector<256x128xbf16>, vector<8x128xf32> -> vector<8x128xf32>
    %c0_30 = arith.constant 0 : index
    %c0_31 = arith.constant 0 : index
    %37 = vector.load %arg3[%c0_30, %c0_31] : memref<1x128xf32, #tpu.memory_space<vmem>>, vector<1x128xf32>
    %38 = vector.broadcast %37 : vector<1x128xf32> to vector<8x128xf32>
    %39 = arith.addf %36, %38 : vector<8x128xf32>
    %cst_32 = arith.constant 0.000000e+00 : f32
    %40 = vector.broadcast %cst_32 : f32 to vector<8x128xf32>
    %41 = arith.maximumf %39, %40 : vector<8x128xf32>
    %42 = arith.truncf %41 : vector<8x128xf32> to vector<8x128xbf16>
    %43 = tpu.concatenate %7, %9 in 1 : vector<8x128xbf16>, vector<8x128xbf16> -> vector<8x256xbf16>
    %c0_33 = arith.constant 0 : index
    %c0_34 = arith.constant 0 : index
    %44 = vector.load %arg2[%c0_33, %c0_34] : memref<256x128xbf16, #tpu.memory_space<vmem>>, vector<256x128xbf16>
    %cst_35 = arith.constant dense<0.000000e+00> : vector<8x128xf32>
    %45 = tpu.matmul %43, %44, %cst_35 {dimension_numbers = #tpu.dot_dimension_numbers<[1], [0], [0], [1], [0, 0, 1, 1], [], []>} : vector<8x256xbf16>, vector<256x128xbf16>, vector<8x128xf32> -> vector<8x128xf32>
    %c0_36 = arith.constant 0 : index
    %c0_37 = arith.constant 0 : index
    %46 = vector.load %arg3[%c0_36, %c0_37] : memref<1x128xf32, #tpu.memory_space<vmem>>, vector<1x128xf32>
    %47 = vector.broadcast %46 : vector<1x128xf32> to vector<8x128xf32>
    %48 = arith.addf %45, %47 : vector<8x128xf32>
    %cst_38 = arith.constant 0.000000e+00 : f32
    %49 = vector.broadcast %cst_38 : f32 to vector<8x128xf32>
    %50 = arith.maximumf %48, %49 : vector<8x128xf32>
    %51 = arith.truncf %50 : vector<8x128xf32> to vector<8x128xbf16>
    %52 = tpu.concatenate %9, %11 in 1 : vector<8x128xbf16>, vector<8x128xbf16> -> vector<8x256xbf16>
    %c0_39 = arith.constant 0 : index
    %c0_40 = arith.constant 0 : index
    %53 = vector.load %arg2[%c0_39, %c0_40] : memref<256x128xbf16, #tpu.memory_space<vmem>>, vector<256x128xbf16>
    %cst_41 = arith.constant dense<0.000000e+00> : vector<8x128xf32>
    %54 = tpu.matmul %52, %53, %cst_41 {dimension_numbers = #tpu.dot_dimension_numbers<[1], [0], [0], [1], [0, 0, 1, 1], [], []>} : vector<8x256xbf16>, vector<256x128xbf16>, vector<8x128xf32> -> vector<8x128xf32>
    %c0_42 = arith.constant 0 : index
    %c0_43 = arith.constant 0 : index
    %55 = vector.load %arg3[%c0_42, %c0_43] : memref<1x128xf32, #tpu.memory_space<vmem>>, vector<1x128xf32>
    %56 = vector.broadcast %55 : vector<1x128xf32> to vector<8x128xf32>
    %57 = arith.addf %54, %56 : vector<8x128xf32>
    %cst_44 = arith.constant 0.000000e+00 : f32
    %58 = vector.broadcast %cst_44 : f32 to vector<8x128xf32>
    %59 = arith.maximumf %57, %58 : vector<8x128xf32>
    %60 = arith.truncf %59 : vector<8x128xf32> to vector<8x128xbf16>
    %61 = tpu.concatenate %11, %13 in 1 : vector<8x128xbf16>, vector<8x128xbf16> -> vector<8x256xbf16>
    %c0_45 = arith.constant 0 : index
    %c0_46 = arith.constant 0 : index
    %62 = vector.load %arg2[%c0_45, %c0_46] : memref<256x128xbf16, #tpu.memory_space<vmem>>, vector<256x128xbf16>
    %cst_47 = arith.constant dense<0.000000e+00> : vector<8x128xf32>
    %63 = tpu.matmul %61, %62, %cst_47 {dimension_numbers = #tpu.dot_dimension_numbers<[1], [0], [0], [1], [0, 0, 1, 1], [], []>} : vector<8x256xbf16>, vector<256x128xbf16>, vector<8x128xf32> -> vector<8x128xf32>
    %c0_48 = arith.constant 0 : index
    %c0_49 = arith.constant 0 : index
    %64 = vector.load %arg3[%c0_48, %c0_49] : memref<1x128xf32, #tpu.memory_space<vmem>>, vector<1x128xf32>
    %65 = vector.broadcast %64 : vector<1x128xf32> to vector<8x128xf32>
    %66 = arith.addf %63, %65 : vector<8x128xf32>
    %cst_50 = arith.constant 0.000000e+00 : f32
    %67 = vector.broadcast %cst_50 : f32 to vector<8x128xf32>
    %68 = arith.maximumf %66, %67 : vector<8x128xf32>
    %69 = arith.truncf %68 : vector<8x128xf32> to vector<8x128xbf16>
    %70 = tpu.concatenate %13, %15 in 1 : vector<8x128xbf16>, vector<8x128xbf16> -> vector<8x256xbf16>
    %c0_51 = arith.constant 0 : index
    %c0_52 = arith.constant 0 : index
    %71 = vector.load %arg2[%c0_51, %c0_52] : memref<256x128xbf16, #tpu.memory_space<vmem>>, vector<256x128xbf16>
    %cst_53 = arith.constant dense<0.000000e+00> : vector<8x128xf32>
    %72 = tpu.matmul %70, %71, %cst_53 {dimension_numbers = #tpu.dot_dimension_numbers<[1], [0], [0], [1], [0, 0, 1, 1], [], []>} : vector<8x256xbf16>, vector<256x128xbf16>, vector<8x128xf32> -> vector<8x128xf32>
    %c0_54 = arith.constant 0 : index
    %c0_55 = arith.constant 0 : index
    %73 = vector.load %arg3[%c0_54, %c0_55] : memref<1x128xf32, #tpu.memory_space<vmem>>, vector<1x128xf32>
    %74 = vector.broadcast %73 : vector<1x128xf32> to vector<8x128xf32>
    %75 = arith.addf %72, %74 : vector<8x128xf32>
    %cst_56 = arith.constant 0.000000e+00 : f32
    %76 = vector.broadcast %cst_56 : f32 to vector<8x128xf32>
    %77 = arith.maximumf %75, %76 : vector<8x128xf32>
    %78 = arith.truncf %77 : vector<8x128xf32> to vector<8x128xbf16>
    %79 = tpu.concatenate %24, %33, %42 in 1 : vector<8x128xbf16>, vector<8x128xbf16>, vector<8x128xbf16> -> vector<8x384xbf16>
    %c0_57 = arith.constant 0 : index
    %c0_58 = arith.constant 0 : index
    %80 = vector.load %arg4[%c0_57, %c0_58] : memref<384x256xbf16, #tpu.memory_space<vmem>>, vector<384x256xbf16>
    %cst_59 = arith.constant dense<0.000000e+00> : vector<8x256xf32>
    %81 = tpu.matmul %79, %80, %cst_59 {dimension_numbers = #tpu.dot_dimension_numbers<[1], [0], [0], [1], [0, 0, 1, 1], [], []>} : vector<8x384xbf16>, vector<384x256xbf16>, vector<8x256xf32> -> vector<8x256xf32>
    %c0_60 = arith.constant 0 : index
    %c0_61 = arith.constant 0 : index
    %82 = vector.load %arg5[%c0_60, %c0_61] : memref<1x256xf32, #tpu.memory_space<vmem>>, vector<1x256xf32>
    %83 = vector.broadcast %82 : vector<1x256xf32> to vector<8x256xf32>
    %84 = arith.addf %81, %83 : vector<8x256xf32>
    %cst_62 = arith.constant 0.000000e+00 : f32
    %85 = vector.broadcast %cst_62 : f32 to vector<8x256xf32>
    %86 = arith.maximumf %84, %85 : vector<8x256xf32>
    %87 = arith.truncf %86 : vector<8x256xf32> to vector<8x256xbf16>
    %88 = tpu.concatenate %33, %42, %51 in 1 : vector<8x128xbf16>, vector<8x128xbf16>, vector<8x128xbf16> -> vector<8x384xbf16>
    %c0_63 = arith.constant 0 : index
    %c0_64 = arith.constant 0 : index
    %89 = vector.load %arg4[%c0_63, %c0_64] : memref<384x256xbf16, #tpu.memory_space<vmem>>, vector<384x256xbf16>
    %cst_65 = arith.constant dense<0.000000e+00> : vector<8x256xf32>
    %90 = tpu.matmul %88, %89, %cst_65 {dimension_numbers = #tpu.dot_dimension_numbers<[1], [0], [0], [1], [0, 0, 1, 1], [], []>} : vector<8x384xbf16>, vector<384x256xbf16>, vector<8x256xf32> -> vector<8x256xf32>
    %c0_66 = arith.constant 0 : index
    %c0_67 = arith.constant 0 : index
    %91 = vector.load %arg5[%c0_66, %c0_67] : memref<1x256xf32, #tpu.memory_space<vmem>>, vector<1x256xf32>
    %92 = vector.broadcast %91 : vector<1x256xf32> to vector<8x256xf32>
    %93 = arith.addf %90, %92 : vector<8x256xf32>
    %cst_68 = arith.constant 0.000000e+00 : f32
    %94 = vector.broadcast %cst_68 : f32 to vector<8x256xf32>
    %95 = arith.maximumf %93, %94 : vector<8x256xf32>
    %96 = arith.truncf %95 : vector<8x256xf32> to vector<8x256xbf16>
    %97 = tpu.concatenate %42, %51, %60 in 1 : vector<8x128xbf16>, vector<8x128xbf16>, vector<8x128xbf16> -> vector<8x384xbf16>
    %c0_69 = arith.constant 0 : index
    %c0_70 = arith.constant 0 : index
    %98 = vector.load %arg4[%c0_69, %c0_70] : memref<384x256xbf16, #tpu.memory_space<vmem>>, vector<384x256xbf16>
    %cst_71 = arith.constant dense<0.000000e+00> : vector<8x256xf32>
    %99 = tpu.matmul %97, %98, %cst_71 {dimension_numbers = #tpu.dot_dimension_numbers<[1], [0], [0], [1], [0, 0, 1, 1], [], []>} : vector<8x384xbf16>, vector<384x256xbf16>, vector<8x256xf32> -> vector<8x256xf32>
    %c0_72 = arith.constant 0 : index
    %c0_73 = arith.constant 0 : index
    %100 = vector.load %arg5[%c0_72, %c0_73] : memref<1x256xf32, #tpu.memory_space<vmem>>, vector<1x256xf32>
    %101 = vector.broadcast %100 : vector<1x256xf32> to vector<8x256xf32>
    %102 = arith.addf %99, %101 : vector<8x256xf32>
    %cst_74 = arith.constant 0.000000e+00 : f32
    %103 = vector.broadcast %cst_74 : f32 to vector<8x256xf32>
    %104 = arith.maximumf %102, %103 : vector<8x256xf32>
    %105 = arith.truncf %104 : vector<8x256xf32> to vector<8x256xbf16>
    %106 = tpu.concatenate %51, %60, %69 in 1 : vector<8x128xbf16>, vector<8x128xbf16>, vector<8x128xbf16> -> vector<8x384xbf16>
    %c0_75 = arith.constant 0 : index
    %c0_76 = arith.constant 0 : index
    %107 = vector.load %arg4[%c0_75, %c0_76] : memref<384x256xbf16, #tpu.memory_space<vmem>>, vector<384x256xbf16>
    %cst_77 = arith.constant dense<0.000000e+00> : vector<8x256xf32>
    %108 = tpu.matmul %106, %107, %cst_77 {dimension_numbers = #tpu.dot_dimension_numbers<[1], [0], [0], [1], [0, 0, 1, 1], [], []>} : vector<8x384xbf16>, vector<384x256xbf16>, vector<8x256xf32> -> vector<8x256xf32>
    %c0_78 = arith.constant 0 : index
    %c0_79 = arith.constant 0 : index
    %109 = vector.load %arg5[%c0_78, %c0_79] : memref<1x256xf32, #tpu.memory_space<vmem>>, vector<1x256xf32>
    %110 = vector.broadcast %109 : vector<1x256xf32> to vector<8x256xf32>
    %111 = arith.addf %108, %110 : vector<8x256xf32>
    %cst_80 = arith.constant 0.000000e+00 : f32
    %112 = vector.broadcast %cst_80 : f32 to vector<8x256xf32>
    %113 = arith.maximumf %111, %112 : vector<8x256xf32>
    %114 = arith.truncf %113 : vector<8x256xf32> to vector<8x256xbf16>
    %115 = tpu.concatenate %60, %69, %78 in 1 : vector<8x128xbf16>, vector<8x128xbf16>, vector<8x128xbf16> -> vector<8x384xbf16>
    %c0_81 = arith.constant 0 : index
    %c0_82 = arith.constant 0 : index
    %116 = vector.load %arg4[%c0_81, %c0_82] : memref<384x256xbf16, #tpu.memory_space<vmem>>, vector<384x256xbf16>
    %cst_83 = arith.constant dense<0.000000e+00> : vector<8x256xf32>
    %117 = tpu.matmul %115, %116, %cst_83 {dimension_numbers = #tpu.dot_dimension_numbers<[1], [0], [0], [1], [0, 0, 1, 1], [], []>} : vector<8x384xbf16>, vector<384x256xbf16>, vector<8x256xf32> -> vector<8x256xf32>
    %c0_84 = arith.constant 0 : index
    %c0_85 = arith.constant 0 : index
    %118 = vector.load %arg5[%c0_84, %c0_85] : memref<1x256xf32, #tpu.memory_space<vmem>>, vector<1x256xf32>
    %119 = vector.broadcast %118 : vector<1x256xf32> to vector<8x256xf32>
    %120 = arith.addf %117, %119 : vector<8x256xf32>
    %cst_86 = arith.constant 0.000000e+00 : f32
    %121 = vector.broadcast %cst_86 : f32 to vector<8x256xf32>
    %122 = arith.maximumf %120, %121 : vector<8x256xf32>
    %123 = arith.truncf %122 : vector<8x256xf32> to vector<8x256xbf16>
    %124 = tpu.concatenate %87, %96, %105, %114, %123 in 1 : vector<8x256xbf16>, vector<8x256xbf16>, vector<8x256xbf16>, vector<8x256xbf16>, vector<8x256xbf16> -> vector<8x1280xbf16>
    %c0_87 = arith.constant 0 : index
    %c0_88 = arith.constant 0 : index
    %125 = vector.load %arg6[%c0_87, %c0_88] : memref<1280x128xbf16, #tpu.memory_space<vmem>>, vector<1280x128xbf16>
    %cst_89 = arith.constant dense<0.000000e+00> : vector<8x128xf32>
    %126 = tpu.matmul %124, %125, %cst_89 {dimension_numbers = #tpu.dot_dimension_numbers<[1], [0], [0], [1], [0, 0, 1, 1], [], []>} : vector<8x1280xbf16>, vector<1280x128xbf16>, vector<8x128xf32> -> vector<8x128xf32>
    %c0_90 = arith.constant 0 : index
    %c0_91 = arith.constant 0 : index
    %127 = vector.load %arg7[%c0_90, %c0_91] : memref<1x128xf32, #tpu.memory_space<vmem>>, vector<1x128xf32>
    %128 = vector.broadcast %127 : vector<1x128xf32> to vector<8x128xf32>
    %129 = arith.addf %126, %128 : vector<8x128xf32>
    %cst_92 = arith.constant 0.000000e+00 : f32
    %130 = vector.broadcast %cst_92 : f32 to vector<8x128xf32>
    %131 = arith.maximumf %129, %130 : vector<8x128xf32>
    %c0_93 = arith.constant 0 : index
    %c0_94 = arith.constant 0 : index
    %132 = vector.load %arg8[%c0_93, %c0_94] : memref<128x6xf32, #tpu.memory_space<vmem>>, vector<128x6xf32>
    %cst_95 = arith.constant dense<0.000000e+00> : vector<8x6xf32>
    %133 = tpu.matmul %131, %132, %cst_95 {dimension_numbers = #tpu.dot_dimension_numbers<[1], [0], [0], [1], [0, 0, 1, 1], [], []>} : vector<8x128xf32>, vector<128x6xf32>, vector<8x6xf32> -> vector<8x6xf32>
    %c0_96 = arith.constant 0 : index
    %c0_97 = arith.constant 0 : index
    %134 = vector.load %arg9[%c0_96, %c0_97] : memref<1x6xf32, #tpu.memory_space<vmem>>, vector<1x6xf32>
    %135 = vector.broadcast %134 : vector<1x6xf32> to vector<8x6xf32>
    %136 = arith.addf %133, %135 : vector<8x6xf32>
    %cst_98 = arith.constant dense<0xFF800000> : vector<8xf32>
    %137 = vector.multi_reduction <maximumf>, %136, %cst_98 [1] : vector<8x6xf32> to vector<8xf32>
    %138 = vector.shape_cast %137 : vector<8xf32> to vector<8x1xf32>
    %139 = tpu.iota {dimensions = array<i32: 1>} : vector<8x6xi32>
    %140 = vector.broadcast %138 : vector<8x1xf32> to vector<8x6xf32>
    %141 = arith.cmpf oeq, %136, %140 : vector<8x6xf32>
    %c6_i32 = arith.constant 6 : i32
    %142 = vector.broadcast %c6_i32 : i32 to vector<8x6xi32>
    %143 = arith.select %141, %139, %142 : vector<8x6xi1>, vector<8x6xi32>
    %cst_99 = arith.constant dense<2147483647> : vector<8xi32>
    %144 = vector.multi_reduction <minsi>, %143, %cst_99 [1] : vector<8x6xi32> to vector<8xi32>
    %145 = vector.shape_cast %144 : vector<8xi32> to vector<8x1xi32>
    %c0_100 = arith.constant 0 : index
    %c0_101 = arith.constant 0 : index
    %146 = vector.load %arg10[%c0_100, %c0_101] : memref<8x1xi32, #tpu.memory_space<vmem>>, vector<8x1xi32>
    tpu.vector_store %arg10[%c0_100, %c0_101], %145 {strides = array<i32>} : memref<8x1xi32, #tpu.memory_space<vmem>>, vector<8x1xi32>,
    return
  }
  func.func @transform_0(%arg0: i32) -> (i32, i32, i32) {
    %c0_i32 = arith.constant 0 : i32
    %c0_i32_0 = arith.constant 0 : i32
    %c0_i32_1 = arith.constant 0 : i32
    return %c0_i32, %arg0, %c0_i32_0 : i32, i32, i32
  }
  func.func @transform_1(%arg0: i32) -> (i32, i32) {
    %c0_i32 = arith.constant 0 : i32
    %c0_i32_0 = arith.constant 0 : i32
    %c0_i32_1 = arith.constant 0 : i32
    return %c0_i32, %c0_i32_0 : i32, i32
  }
  func.func @transform_2(%arg0: i32) -> (i32, i32) {
    %c0_i32 = arith.constant 0 : i32
    %c0_i32_0 = arith.constant 0 : i32
    %c0_i32_1 = arith.constant 0 : i32
    return %c0_i32, %c0_i32_0 : i32, i32
  }
  func.func @transform_3(%arg0: i32) -> (i32, i32) {
    %c0_i32 = arith.constant 0 : i32
    %c0_i32_0 = arith.constant 0 : i32
    %c0_i32_1 = arith.constant 0 : i32
    return %c0_i32, %c0_i32_0 : i32, i32
  }
  func.func @transform_4(%arg0: i32) -> (i32, i32) {
    %c0_i32 = arith.constant 0 : i32
    %c0_i32_0 = arith.constant 0 : i32
    %c0_i32_1 = arith.constant 0 : i32
    return %c0_i32, %c0_i32_0 : i32, i32
  }
  func.func @transform_5(%arg0: i32) -> (i32, i32) {
    %c0_i32 = arith.constant 0 : i32
    %c0_i32_0 = arith.constant 0 : i32
    %c0_i32_1 = arith.constant 0 : i32
    return %c0_i32, %c0_i32_0 : i32, i32
  }
  func.func @transform_6(%arg0: i32) -> (i32, i32) {
    %c0_i32 = arith.constant 0 : i32
    %c0_i32_0 = arith.constant 0 : i32
    %c0_i32_1 = arith.constant 0 : i32
    return %c0_i32, %c0_i32_0 : i32, i32
  }
  func.func @transform_7(%arg0: i32) -> (i32, i32) {
    %c0_i32 = arith.constant 0 : i32
    %c0_i32_0 = arith.constant 0 : i32
    %c0_i32_1 = arith.constant 0 : i32
    return %c0_i32, %c0_i32_0 : i32, i32
  }
  func.func @transform_8(%arg0: i32) -> (i32, i32) {
    %c0_i32 = arith.constant 0 : i32
    %c0_i32_0 = arith.constant 0 : i32
    %c0_i32_1 = arith.constant 0 : i32
    return %c0_i32, %c0_i32_0 : i32, i32
  }
  func.func @transform_9(%arg0: i32) -> (i32, i32) {
    %c0_i32 = arith.constant 0 : i32
    %c0_i32_0 = arith.constant 0 : i32
    return %arg0, %c0_i32 : i32, i32
  }
}

</mosaic_0001>

<bundles_post_ra>
// kernel: policy_infer.1
= control target key start
LH: loop header
LB: loop body
LE: loop exit
PB: predicated region body
PF: predicated region fallthrough
CT: control target
= control target key end

     0   :  { %v3959_v58 = vmov 0   ;;  %vm2820_vm0 = vmmov 0   ;;  %vm2148_vm1 = vcmask 48128   ;;  %vm2171_vm4 = vcmask 7168   ;;  %s3949_s1 = inlined_call_operand.vmem [shape: bf16[256,128], index: 1, kind: input, shape index: {}]   ;;  %s3950_s0 = inlined_call_operand.vmem [shape: bf16[8,8,128], index: 0, kind: input, shape index: {}]   ;;  %s3951_s3 = inlined_call_operand.vmem [shape: bf16[384,256], index: 3, kind: input, shape index: {}]   ;;  %s3952_s2 = inlined_call_operand.vmem [shape: f32[1,128], index: 2, kind: input, shape index: {}]   ;;  %s3953_s5 = inlined_call_operand.vmem [shape: bf16[1280,128], index: 5, kind: input, shape index: {}]   ;;  %s3954_s4 = inlined_call_operand.vmem [shape: f32[1,256], index: 4, kind: input, shape index: {}]   ;;  %s3955_s7 = inlined_call_operand.vmem [shape: f32[128,6], index: 7, kind: input, shape index: {}]   ;;  %s3956_s6 = inlined_call_operand.vmem [shape: f32[1,128], index: 6, kind: input, shape index: {}]   ;;  %s3957_s8 = inlined_call_operand.vmem [shape: f32[1,6], index: 8, kind: input, shape index: {}]   ;;  %s3958_s9 = inlined_call_operand.vmem [shape: s32[8,1], index: 9, kind: output, shape index: {}]  }
   0x1   :  { %v2874_v0 = vld [vmem:[%s3949_s1 + $0x78] sm:$0xff]   ;;  %v2886_v2 = vld [vmem:[%s3949_s1 + $0x70] sm:$0xff]   ;;  %v2900_v4 = vld [vmem:[%s3949_s1 + $0x68] sm:$0xff]  }
   0x2   :  { %v2879_v1 = vld [vmem:[%s3949_s1 + $0x38] sm:$0xff]   ;;  %2331 = vmatprep.subr.bf16.mxu0 %v2874_v0  ;;  %2353 = vmatprep.subr.bf16.mxu1 %v2874_v0  ;;  %v2893_v3 = vld [vmem:[%s3949_s1 + $0x30] sm:$0xff]   ;;  %v2907_v5 = vld [vmem:[%s3949_s1 + $0x28] sm:$0xff]  }
   0x3   :  { %2332 = vmatpush3.bf16.msra.mxu0 %v2879_v1  ;;  %2354 = vmatpush3.bf16.msra.mxu1 %v2879_v1  ;;  %v2914_v6 = vld [vmem:[%s3949_s1 + $0x60] sm:$0xff]   ;;  %v2928_v8 = vld [vmem:[%s3949_s1 + $0x58] sm:$0xff]   ;;  %v2942_v10 = vld [vmem:[%s3949_s1 + $0x50] sm:$0xff]  }
   0x4   :  { %2333 = vmatprep.subr.bf16.mxu0 %v2886_v2  ;;  %2355 = vmatprep.subr.bf16.mxu1 %v2886_v2  ;;  %v2921_v7 = vld [vmem:[%s3949_s1 + $0x20] sm:$0xff]   ;;  %v2935_v9 = vld [vmem:[%s3949_s1 + $0x18] sm:$0xff]   ;;  %v2950_v12 = vld [vmem:[%s3950_s0 + $0x8] sm:$0xf] }
   0x5   :  { %v2177_v11 = vld [vmem:[%s3950_s0 + $0x4] sm:$0xf]  ;;  %257 = vmatprep.mubr.bf16.mxu1 %v2950_v12  ;;  %v2958_v13 = vld [vmem:[%s3949_s1 + $0x10] sm:$0xff]   ;;  %v2965_v14 = vld [vmem:[%s3949_s1 + $0x48] sm:$0xff]  }
   0x6   :  { %215 = vmatprep.mubr.bf16.mxu0 %v2177_v11  ;;  %v2972_v15 = vld [vmem:[%s3949_s1 + $0x8] sm:$0xff]   ;;  %v2979_v16 = vld [vmem:[%s3949_s1 + $0x40] sm:$0xff]   ;;  %v3003_v20 = vld [vmem:[%s3950_s0 + $0x10] sm:$0xf] }
   0x7   :  { %2334 = vmatpush3.bf16.msra.mxu0 %v2893_v3  ;;  %2356 = vmatpush3.bf16.msra.mxu1 %v2893_v3  ;;  %v2986_v17 = vld [vmem:[%s3949_s1] sm:$0xff]   ;;  %v2179_v19 = vld [vmem:[%s3950_s0 + $0xc] sm:$0xf]  ;;  %v2181_v21 = vld [vmem:[%s3950_s0 + $0x14] sm:$0xf] }
   0x8   :  { %2335 = vmatprep.subr.bf16.mxu0 %v2900_v4  ;;  %2357 = vmatprep.subr.bf16.mxu1 %v2900_v4  ;;  %v33_v18 = vld [vmem:[%s3950_s0] sm:$0xf]  ;;  %v3045_v22 = vld [vmem:[%s3950_s0 + $0x18] sm:$0xf]  ;;  %v3079_v23 = vld [vmem:[%s3951_s3 + $0x74] ss:$8 sps:$4 sm:$0xff]  }
   0x9   :  { %v3086_v24 = vld [vmem:[%s3951_s3 + $0x70] ss:$8 sps:$4 sm:$0xff]   ;;  %v3092_v25 = vld [vmem:[%s3951_s3 + $0x64] ss:$8 sps:$4 sm:$0xff]   ;;  %v3100_v26 = vld [vmem:[%s3951_s3 + $0x60] ss:$8 sps:$4 sm:$0xff]  }
   0xa   :  { %v3107_v27 = vld [vmem:[%s3951_s3 + $0x54] ss:$8 sps:$4 sm:$0xff]   ;;  %v3117_v29 = vld [vmem:[%s3951_s3 + $0x50] ss:$8 sps:$4 sm:$0xff]   ;;  %v3124_v30 = vld [vmem:[%s3951_s3 + $0x44] ss:$8 sps:$4 sm:$0xff]  }
   0xb   :  { %2336 = vmatpush3.bf16.msra.mxu0 %v2907_v5  ;;  %2358 = vmatpush3.bf16.msra.mxu1 %v2907_v5  ;;  %v2183_v28 = vld [vmem:[%s3950_s0 + $0x1c] sm:$0xf]  ;;  %v3131_v31 = vld [vmem:[%s3951_s3 + $0x40] ss:$8 sps:$4 sm:$0xff]   ;;  %v3145_v33 = vld [vmem:[%s3951_s3 + $0x30] ss:$8 sps:$4 sm:$0xff]  }
   0xc   :  { %2337 = vmatprep.subr.bf16.mxu0 %v2914_v6  ;;  %2359 = vmatprep.subr.bf16.mxu1 %v2914_v6  ;;  %v3138_v32 = vld [vmem:[%s3951_s3 + $0x34] ss:$8 sps:$4 sm:$0xff]   ;;  %v3152_v34 = vld [vmem:[%s3951_s3 + $0x24] ss:$8 sps:$4 sm:$0xff]   ;;  %v3159_v35 = vld [vmem:[%s3951_s3 + $0x20] ss:$8 sps:$4 sm:$0xff]  }
   0xd   :  { %v3166_v36 = vld [vmem:[%s3951_s3 + $0x14] ss:$8 sps:$4 sm:$0xff]   ;;  %v3173_v37 = vld [vmem:[%s3951_s3 + $0x10] ss:$8 sps:$4 sm:$0xff]   ;;  %v3180_v38 = vld [vmem:[%s3951_s3 + $0x4] ss:$8 sps:$4 sm:$0xff]  }
   0xe   :  { %v3187_v39 = vld [vmem:[%s3951_s3] ss:$8 sps:$4 sm:$0xff]   ;;  %v3194_v40 = vld [vmem:[%s3951_s3 + $0xf4] ss:$8 sps:$4 sm:$0xff]   ;;  %v3206_v42 = vld [vmem:[%s3951_s3 + $0xf0] ss:$8 sps:$4 sm:$0xff]  }
   0xf   :  { %2338 = vmatpush3.bf16.msra.mxu0 %v2921_v7  ;;  %2360 = vmatpush3.bf16.msra.mxu1 %v2921_v7  ;;  %v3200_v41 = vld [vmem:[%s3951_s3 + $0x174] ss:$8 sps:$4 sm:$0xff]   ;;  %v3212_v43 = vld [vmem:[%s3951_s3 + $0x170] ss:$8 sps:$4 sm:$0xff]   ;;  %v3218_v44 = vld [vmem:[%s3951_s3 + $0xe4] ss:$8 sps:$4 sm:$0xff]  }
  0x10   :  { %2339 = vmatprep.subr.bf16.mxu0 %v2928_v8  ;;  %2361 = vmatprep.subr.bf16.mxu1 %v2928_v8  ;;  %3967 = vst [vmem:[#allocation2_spill] sm:$0xff] %v3200_v41  ;;  %v3224_v45 = vld [vmem:[%s3951_s3 + $0x164] ss:$8 sps:$4 sm:$0xff]   ;;  %v3231_v46 = vld [vmem:[%s3951_s3 + $0xe0] ss:$8 sps:$4 sm:$0xff]  }
  0x11   :  { %v3237_v47 = vld [vmem:[%s3951_s3 + $0x160] ss:$8 sps:$4 sm:$0xff]   ;;  %v3243_v48 = vld [vmem:[%s3951_s3 + $0xd4] ss:$8 sps:$4 sm:$0xff]   ;;  %v3255_v50 = vld [vmem:[%s3951_s3 + $0xd0] ss:$8 sps:$4 sm:$0xff]  }
  0x12   :  { %v3249_v49 = vld [vmem:[%s3951_s3 + $0x154] ss:$8 sps:$4 sm:$0xff]   ;;  %v3261_v51 = vld [vmem:[%s3951_s3 + $0x150] ss:$8 sps:$4 sm:$0xff]   ;;  %v3267_v52 = vld [vmem:[%s3951_s3 + $0xc4] ss:$8 sps:$4 sm:$0xff]  }
  0x13   :  { %2340 = vmatpush3.bf16.msra.mxu0 %v2935_v9  ;;  %2362 = vmatpush3.bf16.msra.mxu1 %v2935_v9  ;;  %v3273_v53 = vld [vmem:[%s3951_s3 + $0x144] ss:$8 sps:$4 sm:$0xff]   ;;  %v3279_v54 = vld [vmem:[%s3951_s3 + $0xc0] ss:$8 sps:$4 sm:$0xff]   ;;  %v3291_v56 = vld [vmem:[%s3951_s3 + $0xb4] ss:$8 sps:$4 sm:$0xff]  }
  0x14   :  { %2341 = vmatprep.subr.bf16.mxu0 %v2942_v10  ;;  %2363 = vmatprep.subr.bf16.mxu1 %v2942_v10  ;;  %v3285_v55 = vld [vmem:[%s3951_s3 + $0x140] ss:$8 sps:$4 sm:$0xff]   ;;  %v3297_v57 = vld [vmem:[%s3951_s3 + $0x134] ss:$8 sps:$4 sm:$0xff]   ;;  %v3304_v59 = vld [vmem:[%s3951_s3 + $0xb0] ss:$8 sps:$4 sm:$0xff]  }
  0x15   :  { %v3310_v60 = vld [vmem:[%s3951_s3 + $0x130] ss:$8 sps:$4 sm:$0xff]   ;;  %v3316_v61 = vld [vmem:[%s3951_s3 + $0xa4] ss:$8 sps:$4 sm:$0xff]   ;;  %v3328_v63 = vld [vmem:[%s3951_s3 + $0xa0] ss:$8 sps:$4 sm:$0xff]  }
  0x16   :  { %v3322_v62 = vld [vmem:[%s3951_s3 + $0x124] ss:$8 sps:$4 sm:$0xff]  }
  0x17   :  { %2342 = vmatpush3.bf16.msra.mxu0 %v2958_v13  ;;  %2364 = vmatpush3.bf16.msra.mxu1 %v2958_v13  ;;  %3968 = vst [vmem:[#allocation3_spill] sm:$0xff] %v3322_v62 }
  0x18   :  { %2343 = vmatprep.subr.bf16.mxu0 %v2965_v14  ;;  %2365 = vmatprep.subr.bf16.mxu1 %v2965_v14 }
  0x1b   :  { %2344 = vmatpush3.bf16.msra.mxu0 %v2972_v15  ;;  %2366 = vmatpush3.bf16.msra.mxu1 %v2972_v15 }
  0x1c   :  { %2345 = vmatprep.subr.bf16.mxu0 %v2979_v16  ;;  %2367 = vmatprep.subr.bf16.mxu1 %v2979_v16 }
  0x1f   :  { %2346 = vmatpush3.bf16.msra.mxu0 %v2986_v17  ;;  %2368 = vmatpush3.bf16.msra.mxu1 %v2986_v17 }
  0x20   :  { %2375 = vmatprep.subr.bf16.mxu0 %v2874_v0  ;;  %2397 = vmatprep.subr.bf16.mxu1 %v2874_v0 }
  0x22   :  { %216 = vmatmul.mubr.bf16.vlgmr.msra.gmra.mxu0 %v33_v18  ;;  %258 = vmatmul.mubr.bf16.vlgmr.msra.gmra.mxu1 %v2177_v11  ;;  %v3393_v11 = vld [vmem:[%s3952_s2] ss:$0 sm:$0xff] }
  0x23   :  { %2376 = vmatpush3.bf16.msra.mxu0 %v2879_v1  ;;  %2398 = vmatpush3.bf16.msra.mxu1 %v2879_v1 }
  0x24   :  { %2377 = vmatprep.subr.bf16.mxu0 %v2886_v2  ;;  %2399 = vmatprep.subr.bf16.mxu1 %v2886_v2 }
  0x25   :  { %299 = vmatprep.mubr.bf16.mxu0 %v2179_v19  ;;  %341 = vmatprep.mubr.bf16.mxu1 %v3003_v20 }
  0x27   :  { %2378 = vmatpush3.bf16.msra.mxu0 %v2893_v3  ;;  %2400 = vmatpush3.bf16.msra.mxu1 %v2893_v3 }
  0x28   :  { %2379 = vmatprep.subr.bf16.mxu0 %v2900_v4  ;;  %2401 = vmatprep.subr.bf16.mxu1 %v2900_v4 }
  0x2b   :  { %2380 = vmatpush3.bf16.msra.mxu0 %v2907_v5  ;;  %2402 = vmatpush3.bf16.msra.mxu1 %v2907_v5 }
  0x2c   :  { %2381 = vmatprep.subr.bf16.mxu0 %v2914_v6  ;;  %2403 = vmatprep.subr.bf16.mxu1 %v2914_v6 }
  0x2f   :  { %2382 = vmatpush3.bf16.msra.mxu0 %v2921_v7  ;;  %2404 = vmatpush3.bf16.msra.mxu1 %v2921_v7 }
  0x30   :  { %2383 = vmatprep.subr.bf16.mxu0 %v2928_v8  ;;  %2405 = vmatprep.subr.bf16.mxu1 %v2928_v8 }
  0x33   :  { %2384 = vmatpush3.bf16.msra.mxu0 %v2935_v9  ;;  %2406 = vmatpush3.bf16.msra.mxu1 %v2935_v9 }
  0x34   :  { %2385 = vmatprep.subr.bf16.mxu0 %v2942_v10  ;;  %2407 = vmatprep.subr.bf16.mxu1 %v2942_v10 }
  0x37   :  { %2386 = vmatpush3.bf16.msra.mxu0 %v2958_v13  ;;  %2408 = vmatpush3.bf16.msra.mxu1 %v2958_v13 }
  0x38   :  { %2387 = vmatprep.subr.bf16.mxu0 %v2965_v14  ;;  %2409 = vmatprep.subr.bf16.mxu1 %v2965_v14 }
  0x3b   :  { %2388 = vmatpush3.bf16.msra.mxu0 %v2972_v15  ;;  %2410 = vmatpush3.bf16.msra.mxu1 %v2972_v15 }
  0x3c   :  { %2389 = vmatprep.subr.bf16.mxu0 %v2979_v16  ;;  %2411 = vmatprep.subr.bf16.mxu1 %v2979_v16 }
  0x3f   :  { %2390 = vmatpush3.bf16.msra.mxu0 %v2986_v17  ;;  %2412 = vmatpush3.bf16.msra.mxu1 %v2986_v17 }
  0x40   :  { %2419 = vmatprep.subr.bf16.mxu0 %v2874_v0  ;;  %2441 = vmatprep.subr.bf16.mxu1 %v2874_v0 }
  0x42   :  { %300 = vmatmul.mubr.bf16.vlgmr.msra.gmra.mxu0 %v2950_v12  ;;  %342 = vmatmul.mubr.bf16.vlgmr.msra.gmra.mxu1 %v2179_v19 }
  0x43   :  { %2420 = vmatpush3.bf16.msra.mxu0 %v2879_v1  ;;  %2442 = vmatpush3.bf16.msra.mxu1 %v2879_v1 }
  0x44   :  { %2421 = vmatprep.subr.bf16.mxu0 %v2886_v2  ;;  %2443 = vmatprep.subr.bf16.mxu1 %v2886_v2 }
  0x45   :  { %383 = vmatprep.mubr.bf16.mxu0 %v2181_v21  ;;  %425 = vmatprep.mubr.bf16.mxu1 %v3045_v22 }
  0x47   :  { %2422 = vmatpush3.bf16.msra.mxu0 %v2893_v3  ;;  %2444 = vmatpush3.bf16.msra.mxu1 %v2893_v3 }
  0x48   :  { %2423 = vmatprep.subr.bf16.mxu0 %v2900_v4  ;;  %2445 = vmatprep.subr.bf16.mxu1 %v2900_v4 }
  0x4b   :  { %2424 = vmatpush3.bf16.msra.mxu0 %v2907_v5  ;;  %2446 = vmatpush3.bf16.msra.mxu1 %v2907_v5 }
  0x4c   :  { %2425 = vmatprep.subr.bf16.mxu0 %v2914_v6  ;;  %2447 = vmatprep.subr.bf16.mxu1 %v2914_v6 }
  0x4f   :  { %2426 = vmatpush3.bf16.msra.mxu0 %v2921_v7  ;;  %2448 = vmatpush3.bf16.msra.mxu1 %v2921_v7 }
  0x50   :  { %2427 = vmatprep.subr.bf16.mxu0 %v2928_v8  ;;  %2449 = vmatprep.subr.bf16.mxu1 %v2928_v8 }
  0x53   :  { %2428 = vmatpush3.bf16.msra.mxu0 %v2935_v9  ;;  %2450 = vmatpush3.bf16.msra.mxu1 %v2935_v9 }
  0x54   :  { %2429 = vmatprep.subr.bf16.mxu0 %v2942_v10  ;;  %2451 = vmatprep.subr.bf16.mxu1 %v2942_v10 }
  0x57   :  { %2430 = vmatpush3.bf16.msra.mxu0 %v2958_v13  ;;  %2452 = vmatpush3.bf16.msra.mxu1 %v2958_v13 }
  0x58   :  { %2431 = vmatprep.subr.bf16.mxu0 %v2965_v14  ;;  %2453 = vmatprep.subr.bf16.mxu1 %v2965_v14 }
  0x5b   :  { %2432 = vmatpush3.bf16.msra.mxu0 %v2972_v15  ;;  %2454 = vmatpush3.bf16.msra.mxu1 %v2972_v15 }
  0x5c   :  { %2433 = vmatprep.subr.bf16.mxu0 %v2979_v16  ;;  %2455 = vmatprep.subr.bf16.mxu1 %v2979_v16 }
  0x5f   :  { %2434 = vmatpush3.bf16.msra.mxu0 %v2986_v17  ;;  %2456 = vmatpush3.bf16.msra.mxu1 %v2986_v17 }
  0x60   :  { %777 = vmatprep.subr.bf16.mxu1 %v3079_v23  ;;  %2463 = vmatprep.subr.bf16.mxu0 %v2874_v0  ;;  %v3334_v0 = vld [vmem:[%s3951_s3 + $0x120] ss:$8 sps:$4 sm:$0xff]  }
  0x61   :  { %3969 = vst [vmem:[#allocation4_spill] sm:$0xff] %v3334_v0 }
  0x62   :  { %384 = vmatmul.mubr.bf16.vlgmr.msra.gmra.mxu0 %v3003_v20  ;;  %426 = vmatmul.mubr.bf16.vlgmr.msra.gmra.mxu1 %v2181_v21 }
  0x63   :  { %778 = vmatpush1.bf16.msra.mxu1 %v3086_v24  ;;  %2464 = vmatpush3.bf16.msra.mxu0 %v2879_v1  ;;  %v3340_v1 = vld [vmem:[%s3951_s3 + $0x94] ss:$8 sps:$4 sm:$0xff]  }
  0x64   :  { %779 = vmatprep.subr.bf16.mxu1 %v3092_v25  ;;  %2465 = vmatprep.subr.bf16.mxu0 %v2886_v2  ;;  %v3346_v2 = vld [vmem:[%s3951_s3 + $0x114] ss:$8 sps:$4 sm:$0xff]  }
  0x65   :  { %467 = vmatprep.mubr.bf16.mxu0 %v2183_v28 }
  0x67   :  { %780 = vmatpush1.bf16.msra.mxu1 %v3100_v26  ;;  %2466 = vmatpush3.bf16.msra.mxu0 %v2893_v3  ;;  %v3352_v3 = vld [vmem:[%s3951_s3 + $0x90] ss:$8 sps:$4 sm:$0xff]  }
  0x68   :  { %781 = vmatprep.subr.bf16.mxu1 %v3107_v27  ;;  %2467 = vmatprep.subr.bf16.mxu0 %v2900_v4  ;;  %v3358_v4 = vld [vmem:[%s3951_s3 + $0x110] ss:$8 sps:$4 sm:$0xff]  }
  0x6b   :  { %782 = vmatpush1.bf16.msra.mxu1 %v3117_v29  ;;  %2468 = vmatpush3.bf16.msra.mxu0 %v2907_v5  ;;  %v3364_v5 = vld [vmem:[%s3951_s3 + $0x84] ss:$8 sps:$4 sm:$0xff]  }
  0x6c   :  { %783 = vmatprep.subr.bf16.mxu1 %v3124_v30  ;;  %2469 = vmatprep.subr.bf16.mxu0 %v2914_v6  ;;  %v3370_v6 = vld [vmem:[%s3951_s3 + $0x104] ss:$8 sps:$4 sm:$0xff]  }
  0x6f   :  { %784 = vmatpush1.bf16.msra.mxu1 %v3131_v31  ;;  %2470 = vmatpush3.bf16.msra.mxu0 %v2921_v7  ;;  %v3376_v7 = vld [vmem:[%s3951_s3 + $0x80] ss:$8 sps:$4 sm:$0xff]  }
  0x70   :  { %785 = vmatprep.subr.bf16.mxu1 %v3138_v32  ;;  %2471 = vmatprep.subr.bf16.mxu0 %v2928_v8  ;;  %v3382_v8 = vld [vmem:[%s3951_s3 + $0x100] ss:$8 sps:$4 sm:$0xff]  }
  0x73   :  { %786 = vmatpush1.bf16.msra.mxu1 %v3145_v33  ;;  %2472 = vmatpush3.bf16.msra.mxu0 %v2935_v9 }
  0x74   :  { %787 = vmatprep.subr.bf16.mxu1 %v3152_v34  ;;  %2473 = vmatprep.subr.bf16.mxu0 %v2942_v10 }
  0x77   :  { %788 = vmatpush1.bf16.msra.mxu1 %v3159_v35  ;;  %2474 = vmatpush3.bf16.msra.mxu0 %v2958_v13 }
  0x78   :  { %789 = vmatprep.subr.bf16.mxu1 %v3166_v36  ;;  %2475 = vmatprep.subr.bf16.mxu0 %v2965_v14 }
  0x7b   :  { %790 = vmatpush1.bf16.msra.mxu1 %v3173_v37  ;;  %2476 = vmatpush3.bf16.msra.mxu0 %v2972_v15 }
  0x7c   :  { %791 = vmatprep.subr.bf16.mxu1 %v3180_v38  ;;  %2477 = vmatprep.subr.bf16.mxu0 %v2979_v16 }
  0x7f   :  { %792 = vmatpush1.bf16.msra.mxu1 %v3187_v39  ;;  %2478 = vmatpush3.bf16.msra.mxu0 %v2986_v17 }
  0x80   :  { %793 = vmatprep.subr.bf16.mxu1 %v3194_v40  ;;  %818 = vmatprep.subr.bf16.mxu0 %v3200_v41 }
  0x82   :  { %468 = vmatmul.mubr.bf16.vlgmr.msra.gmra.mxu0 %v3045_v22 }
  0x83   :  { %794 = vmatpush2.bf16.msra.mxu1 %v3206_v42  ;;  %819 = vmatpush1.bf16.msra.mxu0 %v3212_v43 }
  0x84   :  { %795 = vmatprep.subr.bf16.mxu1 %v3218_v44  ;;  %820 = vmatprep.subr.bf16.mxu0 %v3224_v45 }
  0x85   :  { %850 = vmatprep.mubr.bf16.mxu0 %v3959_v58 }
  0x87   :  { %796 = vmatpush2.bf16.msra.mxu1 %v3231_v46  ;;  %821 = vmatpush1.bf16.msra.mxu0 %v3237_v47 }
  0x88   :  { %797 = vmatprep.subr.bf16.mxu1 %v3243_v48  ;;  %822 = vmatprep.subr.bf16.mxu0 %v3249_v49 }
  0x8b   :  { %798 = vmatpush2.bf16.msra.mxu1 %v3255_v50  ;;  %823 = vmatpush1.bf16.msra.mxu0 %v3261_v51 }
  0x8c   :  { %799 = vmatprep.subr.bf16.mxu1 %v3267_v52  ;;  %824 = vmatprep.subr.bf16.mxu0 %v3273_v53 }
  0x8f   :  { %800 = vmatpush2.bf16.msra.mxu1 %v3279_v54  ;;  %825 = vmatpush1.bf16.msra.mxu0 %v3285_v55 }
  0x90   :  { %801 = vmatprep.subr.bf16.mxu1 %v3291_v56  ;;  %826 = vmatprep.subr.bf16.mxu0 %v3297_v57 }
  0x93   :  { %802 = vmatpush2.bf16.msra.mxu1 %v3304_v59  ;;  %827 = vmatpush1.bf16.msra.mxu0 %v3310_v60 }
  0x94   :  { %803 = vmatprep.subr.bf16.mxu1 %v3316_v61  ;;  %828 = vmatprep.subr.bf16.mxu0 %v3322_v62 }
  0x97   :  { %804 = vmatpush2.bf16.msra.mxu1 %v3328_v63  ;;  %829 = vmatpush1.bf16.msra.mxu0 %v3334_v0 }
  0x98   :  { %805 = vmatprep.subr.bf16.mxu1 %v3340_v1  ;;  %830 = vmatprep.subr.bf16.mxu0 %v3346_v2 }
  0x9b   :  { %806 = vmatpush2.bf16.msra.mxu1 %v3352_v3  ;;  %831 = vmatpush1.bf16.msra.mxu0 %v3358_v4 }
  0x9c   :  { %807 = vmatprep.subr.bf16.mxu1 %v3364_v5  ;;  %832 = vmatprep.subr.bf16.mxu0 %v3370_v6 }
  0x9f   :  { %808 = vmatpush2.bf16.msra.mxu1 %v3376_v7  ;;  %833 = vmatpush1.bf16.msra.mxu0 %v3382_v8 }
  0xa0   :  { %904 = vmatprep.subr.bf16.mxu1 %v3200_v41  ;;  %863 = vmatprep.subr.bf16.mxu0 %v3079_v23 }
  0xe2   :  { %v2347_v9 = vpop.f32.mrf.mxu0  ;;  %v2369_v10 = vpop.f32.mrf.mxu1 }
  0xe4   :  { %v2348_v12 = vpop.f32.mrf.mxu0  ;;  %v2370_v13 = vpop.f32.mrf.mxu1 }
  0xe5   :  { %v2349_v14 = vadd.f32 %v2348_v12, %v2347_v9  ;;  %v2371_v15 = vadd.f32 %v2370_v13, %v2369_v10  ;;  %v3970_v9 = vmov 0  }
  0xe6   :  { %v2350_v16 = vpop.f32.mrf.mxu0  ;;  %v2372_v17 = vpop.f32.mrf.mxu1 }
  0xe7   :  { %v218_v18 = vadd.f32 %v2349_v14, %v3393_v11  ;;  %v260_v19 = vadd.f32 %v2371_v15, %v3393_v11 }
  0xe8   :  { %v2351_v20 = vpop.f32.mrf.mxu0  ;;  %v2373_v21 = vpop.f32.mrf.mxu1 }
  0xe9   :  { %v223_v22 = vmax.f32 %v218_v18, 0.0  ;;  %v265_v28 = vmax.f32 %v260_v19, 0.0 }
  0xeb   :  { %v224_v58 = vpack.c.bf16 %v223_v22, %v223_v22  ;;  %v3397_v41 = vpack.c.bf16 %v265_v28, %v265_v28 }
  0xed   :  { %809 = vmatprep.mubr.bf16.mxu1 %v3397_v41 }
  0xee   :  { %810 = vmatmul.mubr.bf16.vlgmr.msra.gmra.mxu1 %v224_v58 }
  0xef   :  { %905 = vmatpush1.bf16.msra.mxu1 %v3212_v43  ;;  %936 = vmatprep.mubr.bf16.mxu1 %v3970_v9 }
  0xf0   :  { %906 = vmatprep.subr.bf16.mxu1 %v3224_v45 }
  0xf3   :  { %907 = vmatpush1.bf16.msra.mxu1 %v3237_v47 }
  0xf4   :  { %908 = vmatprep.subr.bf16.mxu1 %v3249_v49 }
  0xf7   :  { %909 = vmatpush1.bf16.msra.mxu1 %v3261_v51 }
  0xf8   :  { %910 = vmatprep.subr.bf16.mxu1 %v3273_v53 }
  0xfb   :  { %911 = vmatpush1.bf16.msra.mxu1 %v3285_v55 }
  0xfc   :  { %912 = vmatprep.subr.bf16.mxu1 %v3297_v57 }
  0xff   :  { %913 = vmatpush1.bf16.msra.mxu1 %v3310_v60 }
 0x100   :  { %914 = vmatprep.subr.bf16.mxu1 %v3322_v62 }
 0x102   :  { %v2391_v58 = vpop.f32.mrf.mxu0  ;;  %v2413_v10 = vpop.f32.mrf.mxu1 }
 0x103   :  { %915 = vmatpush1.bf16.msra.mxu1 %v3334_v0 }
 0x104   :  { %v2392_v12 = vpop.f32.mrf.mxu0  ;;  %v2414_v13 = vpop.f32.mrf.mxu1  ;;  %916 = vmatprep.subr.bf16.mxu1 %v3346_v2 }
 0x105   :  { %v2393_v14 = vadd.f32 %v2392_v12, %v2391_v58  ;;  %v2415_v15 = vadd.f32 %v2414_v13, %v2413_v10 }
 0x106   :  { %v2394_v16 = vpop.f32.mrf.mxu0  ;;  %v2416_v17 = vpop.f32.mrf.mxu1 }
 0x107   :  { %v302_v18 = vadd.f32 %v2393_v14, %v3393_v11  ;;  %v344_v19 = vadd.f32 %v2415_v15, %v3393_v11  ;;  %917 = vmatpush1.bf16.msra.mxu1 %v3358_v4 }
 0x108   :  { %v2395_v20 = vpop.f32.mrf.mxu0  ;;  %918 = vmatprep.subr.bf16.mxu1 %v3370_v6  ;;  %v2417_v21 = vpop.f32.mrf.mxu1 }
 0x109   :  { %v307_v22 = vmax.f32 %v302_v18, 0.0  ;;  %v349_v28 = vmax.f32 %v344_v19, 0.0 }
 0x10b   :  { %v3417_v0 = vpack.c.bf16 %v307_v22, %v307_v22  ;;  %v3419_v62 = vpack.c.bf16 %v349_v28, %v349_v28  ;;  %919 = vmatpush1.bf16.msra.mxu1 %v3382_v8 }
 0x10c   :  { %949 = vmatprep.subr.bf16.mxu1 %v3079_v23 }
 0x10d   :  { %851 = vmatmul.mubr.bf16.vlgmr.msra.gmra.mxu0 %v3417_v0 }
 0x10e   :  { %864 = vmatpush1.bf16.msra.mxu0 %v3086_v24  ;;  %895 = vmatprep.mubr.bf16.mxu0 %v3417_v0 }
 0x10f   :  { %937 = vmatmul.mubr.bf16.vlgmr.msra.gmra.mxu1 %v3419_v62  ;;  %865 = vmatprep.subr.bf16.mxu0 %v3092_v25 }
 0x110   :  { %950 = vmatpush1.bf16.msra.mxu1 %v3086_v24  ;;  %981 = vmatprep.mubr.bf16.mxu1 %v3419_v62 }
 0x111   :  { %951 = vmatprep.subr.bf16.mxu1 %v3092_v25 }
 0x112   :  { %866 = vmatpush1.bf16.msra.mxu0 %v3100_v26 }
 0x113   :  { %867 = vmatprep.subr.bf16.mxu0 %v3107_v27 }
 0x114   :  { %952 = vmatpush1.bf16.msra.mxu1 %v3100_v26 }
 0x115   :  { %953 = vmatprep.subr.bf16.mxu1 %v3107_v27 }
 0x116   :  { %868 = vmatpush1.bf16.msra.mxu0 %v3117_v29 }
 0x117   :  { %869 = vmatprep.subr.bf16.mxu0 %v3124_v30 }
 0x118   :  { %954 = vmatpush1.bf16.msra.mxu1 %v3117_v29 }
 0x119   :  { %955 = vmatprep.subr.bf16.mxu1 %v3124_v30 }
 0x11a   :  { %870 = vmatpush1.bf16.msra.mxu0 %v3131_v31 }
 0x11b   :  { %871 = vmatprep.subr.bf16.mxu0 %v3138_v32 }
 0x11c   :  { %956 = vmatpush1.bf16.msra.mxu1 %v3131_v31 }
 0x11d   :  { %957 = vmatprep.subr.bf16.mxu1 %v3138_v32 }
 0x11e   :  { %872 = vmatpush1.bf16.msra.mxu0 %v3145_v33 }
 0x11f   :  { %873 = vmatprep.subr.bf16.mxu0 %v3152_v34 }
 0x120   :  { %958 = vmatpush1.bf16.msra.mxu1 %v3145_v33 }
 0x121   :  { %959 = vmatprep.subr.bf16.mxu1 %v3152_v34 }
 0x122   :  { %874 = vmatpush1.bf16.msra.mxu0 %v3159_v35  ;;  %v2435_v58 = vpop.f32.mrf.mxu0  ;;  %v2457_v10 = vpop.f32.mrf.mxu1 }
 0x123   :  { %875 = vmatprep.subr.bf16.mxu0 %v3166_v36 }
 0x124   :  { %960 = vmatpush1.bf16.msra.mxu1 %v3159_v35  ;;  %v2436_v12 = vpop.f32.mrf.mxu0  ;;  %v2458_v13 = vpop.f32.mrf.mxu1 }
 0x125   :  { %961 = vmatprep.subr.bf16.mxu1 %v3166_v36  ;;  %v3451_v14 = vadd.f32 %v2436_v12, %v2435_v58  ;;  %v3453_v15 = vadd.f32 %v2458_v13, %v2457_v10  ;;  %v3971_v10 = vld [vmem:[#allocation2_spill] sm:$0xff]  ;;  %v3973_v12 = vld [vmem:[#allocation4_spill] sm:$0xff] }
 0x126   :  { %876 = vmatpush1.bf16.msra.mxu0 %v3173_v37  ;;  %v2438_v16 = vpop.f32.mrf.mxu0  ;;  %v2460_v17 = vpop.f32.mrf.mxu1 }
 0x127   :  { %877 = vmatprep.subr.bf16.mxu0 %v3180_v38  ;;  %v428_v16 = vadd.f32 %v3453_v15, %v3393_v11  ;;  %v2745_v15 = vld [vmem:[%s3953_s5 + $0x20] sm:$0xff]  }
 0x128   :  { %962 = vmatpush1.bf16.msra.mxu1 %v3173_v37  ;;  %v2439_v18 = vpop.f32.mrf.mxu0  ;;  %v2461_v19 = vpop.f32.mrf.mxu1 }
 0x129   :  { %963 = vmatprep.subr.bf16.mxu1 %v3180_v38  ;;  %v2746_v19 = vld [vmem:[%s3953_s5 + $0x58] sm:$0xff]  }
 0x12a   :  { %878 = vmatpush1.bf16.msra.mxu0 %v3187_v39 }
 0x12b   :  { %879 = vmatprep.subr.bf16.mxu0 %v3194_v40 }
 0x12c   :  { %964 = vmatpush1.bf16.msra.mxu1 %v3187_v39 }
 0x12d   :  { %965 = vmatprep.subr.bf16.mxu1 %v3194_v40 }
 0x12e   :  { %880 = vmatpush2.bf16.msra.mxu0 %v3206_v42 }
 0x12f   :  { %881 = vmatprep.subr.bf16.mxu0 %v3218_v44 }
 0x130   :  { %966 = vmatpush2.bf16.msra.mxu1 %v3206_v42 }
 0x131   :  { %967 = vmatprep.subr.bf16.mxu1 %v3218_v44 }
 0x132   :  { %882 = vmatpush2.bf16.msra.mxu0 %v3231_v46 }
 0x133   :  { %883 = vmatprep.subr.bf16.mxu0 %v3243_v48 }
 0x134   :  { %968 = vmatpush2.bf16.msra.mxu1 %v3231_v46 }
 0x135   :  { %969 = vmatprep.subr.bf16.mxu1 %v3243_v48 }
 0x136   :  { %884 = vmatpush2.bf16.msra.mxu0 %v3255_v50 }
 0x137   :  { %885 = vmatprep.subr.bf16.mxu0 %v3267_v52 }
 0x138   :  { %970 = vmatpush2.bf16.msra.mxu1 %v3255_v50 }
 0x139   :  { %971 = vmatprep.subr.bf16.mxu1 %v3267_v52 }
 0x13a   :  { %886 = vmatpush2.bf16.msra.mxu0 %v3279_v54 }
 0x13b   :  { %887 = vmatprep.subr.bf16.mxu0 %v3291_v56 }
 0x13c   :  { %972 = vmatpush2.bf16.msra.mxu1 %v3279_v54 }
 0x13d   :  { %973 = vmatprep.subr.bf16.mxu1 %v3291_v56 }
 0x13e   :  { %888 = vmatpush2.bf16.msra.mxu0 %v3304_v59 }
 0x13f   :  { %889 = vmatprep.subr.bf16.mxu0 %v3316_v61 }
 0x140   :  { %974 = vmatpush2.bf16.msra.mxu1 %v3304_v59 }
 0x141   :  { %975 = vmatprep.subr.bf16.mxu1 %v3316_v61 }
 0x142   :  { %890 = vmatpush2.bf16.msra.mxu0 %v3328_v63  ;;  %v2479_v20 = vpop.f32.mrf.mxu0 }
 0x143   :  { %891 = vmatprep.subr.bf16.mxu0 %v3340_v1 }
 0x144   :  { %976 = vmatpush2.bf16.msra.mxu1 %v3328_v63  ;;  %v2480_v21 = vpop.f32.mrf.mxu0 }
 0x145   :  { %977 = vmatprep.subr.bf16.mxu1 %v3340_v1  ;;  %v3487_v22 = vadd.f32 %v2480_v21, %v2479_v20  ;;  %v2747_v21 = vld [vmem:[%s3953_s5 + $0x18] sm:$0xff]  }
 0x146   :  { %892 = vmatpush2.bf16.msra.mxu0 %v3352_v3  ;;  %v2482_v28 = vpop.f32.mrf.mxu0 }
 0x147   :  { %893 = vmatprep.subr.bf16.mxu0 %v3364_v5 }
 0x148   :  { %978 = vmatpush2.bf16.msra.mxu1 %v3352_v3  ;;  %v2483_v58 = vpop.f32.mrf.mxu0 }
 0x149   :  { %979 = vmatprep.subr.bf16.mxu1 %v3364_v5  ;;  %v2749_v58 = vld [vmem:[%s3953_s5 + $0x10] sm:$0xff]  }
 0x14a   :  { %894 = vmatpush2.bf16.msra.mxu0 %v3376_v7 }
 0x14b   :  { %990 = vmatprep.subr.bf16.mxu0 %v3971_v10 }
 0x14c   :  { %980 = vmatpush2.bf16.msra.mxu1 %v3376_v7 }
 0x14d   :  { %896 = vmatmul.mubr.bf16.vlgmr.msra.gmra.mxu0 %v3397_v41  ;;  %1076 = vmatprep.subr.bf16.mxu1 %v3971_v10  ;;  %v386_v41 = vadd.f32 %v3451_v14, %v3393_v11  ;;  %v433_v14 = vmax.f32 %v428_v16, 0.0  ;;  %v2753_v16 = vld [vmem:[%s3953_s5] sm:$0xff]  }
 0x14e   :  { %991 = vmatpush1.bf16.msra.mxu0 %v3212_v43  ;;  %1022 = vmatprep.mubr.bf16.mxu0 %v3970_v9 }
 0x14f   :  { %982 = vmatmul.mubr.bf16.vlgmr.msra.gmra.mxu1 %v3417_v0  ;;  %992 = vmatprep.subr.bf16.mxu0 %v3224_v45  ;;  %v3972_v0 = vld [vmem:[#allocation3_spill] sm:$0xff]  ;;  %v391_v13 = vmax.f32 %v386_v41, 0.0  ;;  %v434_v18 = vpack.c.bf16 %v433_v14, %v433_v14 }
 0x150   :  { %1077 = vmatpush1.bf16.msra.mxu1 %v3212_v43  ;;  %1108 = vmatprep.mubr.bf16.mxu1 %v3970_v9 }
 0x151   :  { %1078 = vmatprep.subr.bf16.mxu1 %v3224_v45  ;;  %v3532_v17 = vpack.c.bf16 %v391_v13, %v391_v13  ;;  %v2752_v13 = vld [vmem:[%s3953_s5 + $0x40] sm:$0xff]  }
 0x152   :  { %993 = vmatpush1.bf16.msra.mxu0 %v3237_v47 }
 0x153   :  { %994 = vmatprep.subr.bf16.mxu0 %v3249_v49 }
 0x154   :  { %1079 = vmatpush1.bf16.msra.mxu1 %v3237_v47 }
 0x155   :  { %1080 = vmatprep.subr.bf16.mxu1 %v3249_v49 }
 0x156   :  { %995 = vmatpush1.bf16.msra.mxu0 %v3261_v51 }
 0x157   :  { %996 = vmatprep.subr.bf16.mxu0 %v3273_v53 }
 0x158   :  { %1081 = vmatpush1.bf16.msra.mxu1 %v3261_v51 }
 0x159   :  { %1082 = vmatprep.subr.bf16.mxu1 %v3273_v53 }
 0x15a   :  { %997 = vmatpush1.bf16.msra.mxu0 %v3285_v55 }
 0x15b   :  { %998 = vmatprep.subr.bf16.mxu0 %v3297_v57 }
 0x15c   :  { %1083 = vmatpush1.bf16.msra.mxu1 %v3285_v55 }
 0x15d   :  { %1084 = vmatprep.subr.bf16.mxu1 %v3297_v57 }
 0x15e   :  { %999 = vmatpush1.bf16.msra.mxu0 %v3310_v60 }
 0x15f   :  { %1000 = vmatprep.subr.bf16.mxu0 %v3972_v0 }
 0x160   :  { %1085 = vmatpush1.bf16.msra.mxu1 %v3310_v60 }
 0x161   :  { %1086 = vmatprep.subr.bf16.mxu1 %v3972_v0 }
 0x162   :  { %1001 = vmatpush1.bf16.msra.mxu0 %v3973_v12 }
 0x163   :  { %1002 = vmatprep.subr.bf16.mxu0 %v3346_v2 }
 0x164   :  { %1087 = vmatpush1.bf16.msra.mxu1 %v3973_v12 }
 0x165   :  { %1088 = vmatprep.subr.bf16.mxu1 %v3346_v2 }
 0x166   :  { %1003 = vmatpush1.bf16.msra.mxu0 %v3358_v4 }
 0x167   :  { %1004 = vmatprep.subr.bf16.mxu0 %v3370_v6 }
 0x168   :  { %1089 = vmatpush1.bf16.msra.mxu1 %v3358_v4 }
 0x169   :  { %1090 = vmatprep.subr.bf16.mxu1 %v3370_v6 }
 0x16a   :  { %1005 = vmatpush1.bf16.msra.mxu0 %v3382_v8 }
 0x16b   :  { %1035 = vmatprep.subr.bf16.mxu0 %v3079_v23 }
 0x16c   :  { %1091 = vmatpush1.bf16.msra.mxu1 %v3382_v8 }
 0x16d   :  { %1023 = vmatmul.mubr.bf16.vlgmr.msra.gmra.mxu0 %v3532_v17  ;;  %1121 = vmatprep.subr.bf16.mxu1 %v3079_v23  ;;  %v2754_v23 = vld [vmem:[%s3953_s5 + $0xf8] sm:$0xff]  }
 0x16e   :  { %1036 = vmatpush1.bf16.msra.mxu0 %v3086_v24  ;;  %1067 = vmatprep.mubr.bf16.mxu0 %v3532_v17 }
 0x16f   :  { %1109 = vmatmul.mubr.bf16.vlgmr.msra.gmra.mxu1 %v434_v18  ;;  %1037 = vmatprep.subr.bf16.mxu0 %v3092_v25 }
 0x170   :  { %1122 = vmatpush1.bf16.msra.mxu1 %v3086_v24  ;;  %1153 = vmatprep.mubr.bf16.mxu1 %v434_v18  ;;  %v2755_v24 = vld [vmem:[%s3953_s5 + $0xb8] sm:$0xff]  }
 0x171   :  { %1123 = vmatprep.subr.bf16.mxu1 %v3092_v25  ;;  %v2756_v25 = vld [vmem:[%s3953_s5 + $0xf0] sm:$0xff]   ;;  %v2771_v18 = vld [vmem:[%s3953_s5 + $0x138] sm:$0xff]  }
 0x172   :  { %1038 = vmatpush1.bf16.msra.mxu0 %v3100_v26 }
 0x173   :  { %1039 = vmatprep.subr.bf16.mxu0 %v3107_v27 }
 0x174   :  { %1124 = vmatpush1.bf16.msra.mxu1 %v3100_v26 }
 0x175   :  { %1125 = vmatprep.subr.bf16.mxu1 %v3107_v27 }
 0x176   :  { %1040 = vmatpush1.bf16.msra.mxu0 %v3117_v29 }
 0x177   :  { %1041 = vmatprep.subr.bf16.mxu0 %v3124_v30 }
 0x178   :  { %1126 = vmatpush1.bf16.msra.mxu1 %v3117_v29  ;;  %v2757_v29 = vld [vmem:[%s3953_s5 + $0xb0] sm:$0xff]  }
 0x179   :  { %1127 = vmatprep.subr.bf16.mxu1 %v3124_v30  ;;  %v2758_v30 = vld [vmem:[%s3953_s5 + $0xe8] sm:$0xff]  }
 0x17a   :  { %1042 = vmatpush1.bf16.msra.mxu0 %v3131_v31 }
 0x17b   :  { %1043 = vmatprep.subr.bf16.mxu0 %v3138_v32 }
 0x17c   :  { %1128 = vmatpush1.bf16.msra.mxu1 %v3131_v31 }
 0x17d   :  { %1129 = vmatprep.subr.bf16.mxu1 %v3138_v32 }
 0x17e   :  { %1044 = vmatpush1.bf16.msra.mxu0 %v3145_v33 }
 0x17f   :  { %1045 = vmatprep.subr.bf16.mxu0 %v3152_v34 }
 0x180   :  { %1130 = vmatpush1.bf16.msra.mxu1 %v3145_v33  ;;  %v2759_v33 = vld [vmem:[%s3953_s5 + $0xa8] sm:$0xff]  }
 0x181   :  { %1131 = vmatprep.subr.bf16.mxu1 %v3152_v34  ;;  %v2760_v34 = vld [vmem:[%s3953_s5 + $0xe0] sm:$0xff]  }
 0x182   :  { %1046 = vmatpush1.bf16.msra.mxu0 %v3159_v35 }
 0x183   :  { %1047 = vmatprep.subr.bf16.mxu0 %v3166_v36 }
 0x184   :  { %1132 = vmatpush1.bf16.msra.mxu1 %v3159_v35  ;;  %v2761_v35 = vld [vmem:[%s3953_s5 + $0xa0] sm:$0xff]  }
 0x185   :  { %1133 = vmatprep.subr.bf16.mxu1 %v3166_v36  ;;  %v2762_v36 = vld [vmem:[%s3953_s5 + $0xd8] sm:$0xff]  }
 0x186   :  { %1048 = vmatpush1.bf16.msra.mxu0 %v3173_v37 }
 0x187   :  { %1049 = vmatprep.subr.bf16.mxu0 %v3180_v38 }
 0x188   :  { %1134 = vmatpush1.bf16.msra.mxu1 %v3173_v37  ;;  %v2763_v37 = vld [vmem:[%s3953_s5 + $0x98] sm:$0xff]  }
 0x189   :  { %1135 = vmatprep.subr.bf16.mxu1 %v3180_v38  ;;  %v2764_v38 = vld [vmem:[%s3953_s5 + $0xd0] sm:$0xff]  }
 0x18a   :  { %1050 = vmatpush1.bf16.msra.mxu0 %v3187_v39 }
 0x18b   :  { %1051 = vmatprep.subr.bf16.mxu0 %v3194_v40 }
 0x18c   :  { %1136 = vmatpush1.bf16.msra.mxu1 %v3187_v39  ;;  %v527_v39 = vlaneseq }
 0x18d   :  { %1137 = vmatprep.subr.bf16.mxu1 %v3194_v40  ;;  %v2765_v40 = vld [vmem:[%s3953_s5 + $0x90] sm:$0xff]  }
 0x18e   :  { %1052 = vmatpush2.bf16.msra.mxu0 %v3206_v42 }
 0x18f   :  { %1053 = vmatprep.subr.bf16.mxu0 %v3218_v44 }
 0x190   :  { %1138 = vmatpush2.bf16.msra.mxu1 %v3206_v42  ;;  %v2766_v42 = vld [vmem:[%s3953_s5 + $0xc8] sm:$0xff]  }
 0x191   :  { %1139 = vmatprep.subr.bf16.mxu1 %v3218_v44  ;;  %v528_v44 = vshrl.u32 %v527_v39, 7 }
 0x192   :  { %1054 = vmatpush2.bf16.msra.mxu0 %v3231_v46 }
 0x193   :  { %1055 = vmatprep.subr.bf16.mxu0 %v3243_v48  ;;  %v529_v20 = vsub.s32 0, %v528_v44 }
 0x194   :  { %1140 = vmatpush2.bf16.msra.mxu1 %v3231_v46  ;;  %v2768_v46 = vld [vmem:[%s3953_s5 + $0xc0] sm:$0xff]  }
 0x195   :  { %1141 = vmatprep.subr.bf16.mxu1 %v3243_v48 }
 0x196   :  { %1056 = vmatpush2.bf16.msra.mxu0 %v3255_v50 }
 0x197   :  { %1057 = vmatprep.subr.bf16.mxu0 %v3267_v52 }
 0x198   :  { %1142 = vmatpush2.bf16.msra.mxu1 %v3255_v50  ;;  %v2769_v50 = vld [vmem:[%s3953_s5 + $0x80] sm:$0xff]  }
 0x199   :  { %1143 = vmatprep.subr.bf16.mxu1 %v3267_v52  ;;  %v2786_v52 = vld [vmem:[%s3953_s5 + $0x1f8] sm:$0xff]  }
 0x19a   :  { %1058 = vmatpush2.bf16.msra.mxu0 %v3279_v54 }
 0x19b   :  { %1059 = vmatprep.subr.bf16.mxu0 %v3291_v56 }
 0x19c   :  { %1144 = vmatpush2.bf16.msra.mxu1 %v3279_v54  ;;  %v2739_v54 = vld [vmem:[%s3953_s5 + $0x38] sm:$0xff]  }
 0x19d   :  { %1145 = vmatprep.subr.bf16.mxu1 %v3291_v56  ;;  %v2740_v56 = vld [vmem:[%s3953_s5 + $0x70] sm:$0xff]  }
 0x19e   :  { %1060 = vmatpush2.bf16.msra.mxu0 %v3304_v59 }
 0x19f   :  { %1061 = vmatprep.subr.bf16.mxu0 %v3316_v61 }
 0x1a0   :  { %1146 = vmatpush2.bf16.msra.mxu1 %v3304_v59 }
 0x1a1   :  { %1147 = vmatprep.subr.bf16.mxu1 %v3316_v61 }
 0x1a2   :  { %1062 = vmatpush2.bf16.msra.mxu0 %v3328_v63 }
 0x1a3   :  { %1063 = vmatprep.subr.bf16.mxu0 %v3340_v1 }
 0x1a4   :  { %1148 = vmatpush2.bf16.msra.mxu1 %v3328_v63 }
 0x1a5   :  { %1149 = vmatprep.subr.bf16.mxu1 %v3340_v1 }
 0x1a6   :  { %1064 = vmatpush2.bf16.msra.mxu0 %v3352_v3 }
 0x1a7   :  { %1065 = vmatprep.subr.bf16.mxu0 %v3364_v5 }
 0x1a8   :  { %1150 = vmatpush2.bf16.msra.mxu1 %v3352_v3 }
 0x1a9   :  { %1151 = vmatprep.subr.bf16.mxu1 %v3364_v5  ;;  %v2743_v5 = vld [vmem:[%s3953_s5 + $0x28] sm:$0xff]  }
 0x1aa   :  { %1066 = vmatpush2.bf16.msra.mxu0 %v3376_v7 }
 0x1ab   :  { %1162 = vmatprep.subr.bf16.mxu0 %v3971_v10  ;;  %v2750_v10 = vld [vmem:[%s3953_s5 + $0x48] sm:$0xff]  }
 0x1ac   :  { %1152 = vmatpush2.bf16.msra.mxu1 %v3376_v7  ;;  %v2744_v7 = vld [vmem:[%s3953_s5 + $0x60] sm:$0xff]  }
 0x1ad   :  { %1068 = vmatmul.mubr.bf16.vlgmr.msra.gmra.mxu0 %v3419_v62  ;;  %2507 = vmatprep.subr.bf16.mxu1 %v2754_v23  ;;  %v2742_v62 = vld [vmem:[%s3953_s5 + $0x68] sm:$0xff]  }
 0x1ae   :  { %1163 = vmatpush1.bf16.msra.mxu0 %v3212_v43  ;;  %v3615_v26 = vpop.f32.mrf.mxu1  ;;  %1194 = vmatprep.mubr.bf16.mxu0 %v3970_v9  ;;  %v470_v43 = vadd.f32 %v3487_v22, %v3393_v11  ;;  %v2748_v22 = vld [vmem:[%s3953_s5 + $0x50] sm:$0xff]  }
 0x1af   :  { %1154 = vmatmul.mubr.bf16.vlgmr.msra.gmra.mxu1 %v3532_v17  ;;  %1164 = vmatprep.subr.bf16.mxu0 %v3224_v45  ;;  %v2767_v45 = vld [vmem:[%s3953_s5 + $0x88] sm:$0xff]   ;;  %v2770_v17 = vld [vmem:[%s3953_s5 + $0x178] sm:$0xff]  }
 0x1b0   :  { %v813_v27 = vpop.f32.mrf.mxu1  ;;  %2508 = vmatpush3.bf16.msra.mxu1 %v2755_v24  ;;  %v475_v48 = vmax.f32 %v470_v43, 0.0  ;;  %v2772_v24 = vld [vmem:[%s3953_s5 + $0x170] sm:$0xff]  }
 0x1b1   :  { %2509 = vmatprep.subr.bf16.mxu1 %v2756_v25  ;;  %v2773_v25 = vld [vmem:[%s3953_s5 + $0x130] sm:$0xff]  }
 0x1b2   :  { %1165 = vmatpush1.bf16.msra.mxu0 %v3237_v47  ;;  %v815_v31 = vpop.f32.mrf.mxu1  ;;  %v533_v47 = vsub.s32 1, %v528_v44 }
 0x1b3   :  { %1166 = vmatprep.subr.bf16.mxu0 %v3249_v49  ;;  %v2738_v49 = vld [vmem:[%s3953_s5 + $0x78] sm:$0xff]  }
 0x1b4   :  { %v816_v32 = vpop.f32.mrf.mxu1  ;;  %2510 = vmatpush3.bf16.msra.mxu1 %v2757_v29  ;;  %v2776_v29 = vld [vmem:[%s3953_s5 + $0x160] sm:$0xff]   ;;  %v2778_v31 = vld [vmem:[%s3953_s5 + $0x158] sm:$0xff]  }
 0x1b5   :  { %2511 = vmatprep.subr.bf16.mxu1 %v2758_v30  ;;  %v2777_v30 = vld [vmem:[%s3953_s5 + $0x120] sm:$0xff]   ;;  %v2779_v32 = vld [vmem:[%s3953_s5 + $0x118] sm:$0xff]  }
 0x1b6   :  { %1167 = vmatpush1.bf16.msra.mxu0 %v3261_v51  ;;  %v525_v51 = vld [vmem:[%s3954_s4] sm:$0x3] }
 0x1b7   :  { %1168 = vmatprep.subr.bf16.mxu0 %v3273_v53  ;;  %v3683_v53 = vrot.slane %v525_v51, %v533_v47  ;;  %v3721_v28 = vrot.slane %v525_v51, %v529_v20  ;;  %v2799_v20 = vld [vmem:[%s3953_s5 + $0x188] sm:$0xff]  }
 0x1b8   :  { %2512 = vmatpush3.bf16.msra.mxu1 %v2759_v33  ;;  %v2780_v33 = vld [vmem:[%s3953_s5 + $0x150] sm:$0xff]  }
 0x1b9   :  { %2513 = vmatprep.subr.bf16.mxu1 %v2760_v34  ;;  %v814_v59 = vadd.f32 %v813_v27, %v3683_v53  ;;  %v812_v41 = vadd.f32 %v3615_v26, %v3721_v28  ;;  %v2774_v26 = vld [vmem:[%s3953_s5 + $0x168] sm:$0xff]   ;;  %v2781_v34 = vld [vmem:[%s3953_s5 + $0x110] sm:$0xff]  }
 0x1ba   :  { %1169 = vmatpush1.bf16.msra.mxu0 %v3285_v55  ;;  %v476_v55 = vpack.c.bf16 %v475_v48, %v475_v48  ;;  %v2775_v27 = vld [vmem:[%s3953_s5 + $0x128] sm:$0xff]  }
 0x1bb   :  { %1170 = vmatprep.subr.bf16.mxu0 %v3297_v57 }
 0x1bc   :  { %2514 = vmatpush3.bf16.msra.mxu1 %v2761_v35  ;;  %v2782_v35 = vld [vmem:[%s3953_s5 + $0x148] sm:$0xff]  }
 0x1bd   :  { %2515 = vmatprep.subr.bf16.mxu1 %v2762_v36  ;;  %v2783_v36 = vld [vmem:[%s3953_s5 + $0x108] sm:$0xff]  }
 0x1be   :  { %1171 = vmatpush1.bf16.msra.mxu0 %v3310_v60  ;;  %v2741_v60 = vld [vmem:[%s3953_s5 + $0x30] sm:$0xff]  }
 0x1bf   :  { %1172 = vmatprep.subr.bf16.mxu0 %v3972_v0  ;;  %v2751_v0 = vld [vmem:[%s3953_s5 + $0x8] sm:$0xff]  }
 0x1c0   :  { %2516 = vmatpush3.bf16.msra.mxu1 %v2763_v37  ;;  %v2784_v37 = vld [vmem:[%s3953_s5 + $0x140] sm:$0xff]  }
 0x1c1   :  { %2517 = vmatprep.subr.bf16.mxu1 %v2764_v38  ;;  %v2785_v38 = vld [vmem:[%s3953_s5 + $0x100] sm:$0xff]  }
 0x1c2   :  { %1173 = vmatpush1.bf16.msra.mxu0 %v3973_v12 }
 0x1c3   :  { %1174 = vmatprep.subr.bf16.mxu0 %v3346_v2 }
 0x1c4   :  { %2518 = vmatpush3.bf16.msra.mxu1 %v2765_v40  ;;  %v2802_v40 = vld [vmem:[%s3953_s5 + $0x278] sm:$0xff]  }
 0x1c5   :  { %2519 = vmatprep.subr.bf16.mxu1 %v2766_v42 }
 0x1c6   :  { %1175 = vmatpush1.bf16.msra.mxu0 %v3358_v4 }
 0x1c7   :  { %1176 = vmatprep.subr.bf16.mxu0 %v3370_v6 }
 0x1c8   :  { %2520 = vmatpush3.bf16.msra.mxu1 %v2767_v45 }
 0x1c9   :  { %2521 = vmatprep.subr.bf16.mxu1 %v2768_v46 }
 0x1ca   :  { %1177 = vmatpush1.bf16.msra.mxu0 %v3382_v8 }
 0x1cb   :  { %2485 = vmatprep.subr.bf16.mxu0 %v2738_v49 }
 0x1cc   :  { %2522 = vmatpush3.bf16.msra.mxu1 %v2769_v50 }
 0x1cd   :  { %1195 = vmatmul.mubr.bf16.vlgmr.msra.gmra.mxu0 %v476_v55  ;;  %v852_v57 = vpop.f32.mrf.mxu0  ;;  %2551 = vmatprep.subr.bf16.mxu1 %v2786_v52 }
 0x1ce   :  { %2486 = vmatpush3.bf16.msra.mxu0 %v2739_v54  ;;  %v853_v12 = vadd.f32 %v852_v57, %v812_v41 }
 0x1cf   :  { %v854_v61 = vpop.f32.mrf.mxu0  ;;  %2487 = vmatprep.subr.bf16.mxu0 %v2740_v56  ;;  %v3699_v63 = vpop.f32.mrf.mxu1 }
 0x1d0   :  { %v855_v1 = vadd.f32 %v854_v61, %v814_v59  ;;  %v859_v14 = vmax.f32 %v853_v12, 0.0  ;;  %v2787_v59 = vld [vmem:[%s3953_s5 + $0x1b8] sm:$0xff]   ;;  %v2788_v61 = vld [vmem:[%s3953_s5 + $0x1f0] sm:$0xff]  }
 0x1d1   :  { %v856_v2 = vpop.f32.mrf.mxu0  ;;  %v3701_v3 = vpop.f32.mrf.mxu1 }
 0x1d2   :  { %v860_v4 = vmax.f32 %v855_v1, 0.0  ;;  %2488 = vmatpush3.bf16.msra.mxu0 %v2741_v60  ;;  %v861_v23 = vpack.c.bf16 %v859_v14, %v859_v14  ;;  %v2791_v1 = vld [vmem:[%s3953_s5 + $0x1a8] sm:$0xff]   ;;  %v2792_v2 = vld [vmem:[%s3953_s5 + $0x1e0] sm:$0xff]  }
 0x1d3   :  { %v857_v6 = vpop.f32.mrf.mxu0  ;;  %2489 = vmatprep.subr.bf16.mxu0 %v2742_v62  ;;  %v942_v8 = vpop.f32.mrf.mxu1  ;;  %v2789_v62 = vld [vmem:[%s3953_s5 + $0x1b0] sm:$0xff]  }
 0x1d4   :  { %v862_v11 = vpack.c.bf16 %v860_v4, %v860_v4  ;;  %v2794_v4 = vld [vmem:[%s3953_s5 + $0x1d8] sm:$0xff]   ;;  %v2796_v6 = vld [vmem:[%s3953_s5 + $0x1d0] sm:$0xff]   ;;  %v2798_v8 = vld [vmem:[%s3953_s5 + $0x1c8] sm:$0xff]  }
 0x1d5   :  { %v943_v9 = vpop.f32.mrf.mxu1 }
 0x1d6   :  { %2490 = vmatpush3.bf16.msra.mxu0 %v2743_v5  ;;  %1886 = vmatprep.mubr.bf16.mxu0 %v862_v11  ;;  %v2795_v5 = vld [vmem:[%s3953_s5 + $0x198] sm:$0xff]  }
 0x1d7   :  { %2491 = vmatprep.subr.bf16.mxu0 %v2744_v7  ;;  %v2797_v7 = vld [vmem:[%s3953_s5 + $0x190] sm:$0xff]  }
 0x1da   :  { %2492 = vmatpush3.bf16.msra.mxu0 %v2745_v15 }
 0x1db   :  { %2493 = vmatprep.subr.bf16.mxu0 %v2746_v19 }
 0x1de   :  { %2494 = vmatpush3.bf16.msra.mxu0 %v2747_v21 }
 0x1df   :  { %2495 = vmatprep.subr.bf16.mxu0 %v2748_v22 }
 0x1e2   :  { %2496 = vmatpush3.bf16.msra.mxu0 %v2749_v58  ;;  %v2800_v58 = vld [vmem:[%s3953_s5 + $0x1c0] sm:$0xff]  }
 0x1e3   :  { %2497 = vmatprep.subr.bf16.mxu0 %v2750_v10 }
 0x1e6   :  { %2498 = vmatpush3.bf16.msra.mxu0 %v2751_v0 }
 0x1e7   :  { %2499 = vmatprep.subr.bf16.mxu0 %v2752_v13 }
 0x1ea   :  { %2500 = vmatpush3.bf16.msra.mxu0 %v2753_v16  ;;  %v2801_v16 = vld [vmem:[%s3953_s5 + $0x180] sm:$0xff]  }
 0x1eb   :  { %2529 = vmatprep.subr.bf16.mxu0 %v2770_v17 }
 0x1ed   :  { %1887 = vmatmul.mubr.bf16.vlgmr.msra.gmra.mxu0 %v861_v23  ;;  %v2803_v23 = vld [vmem:[%s3953_s5 + $0x238] sm:$0xff]  }
 0x1ee   :  { %2530 = vmatpush3.bf16.msra.mxu0 %v2771_v18 }
 0x1ef   :  { %2531 = vmatprep.subr.bf16.mxu0 %v2772_v24 }
 0x1f2   :  { %2532 = vmatpush3.bf16.msra.mxu0 %v2773_v25 }
 0x1f3   :  { %2533 = vmatprep.subr.bf16.mxu0 %v2774_v26  ;;  %v2804_v26 = vld [vmem:[%s3953_s5 + $0x270] sm:$0xff]  }
 0x1f6   :  { %2534 = vmatpush3.bf16.msra.mxu0 %v2775_v27  ;;  %v2805_v27 = vld [vmem:[%s3953_s5 + $0x230] sm:$0xff]  }
 0x1f7   :  { %2535 = vmatprep.subr.bf16.mxu0 %v2776_v29  ;;  %v2806_v29 = vld [vmem:[%s3953_s5 + $0x268] sm:$0xff]  }
 0x1fa   :  { %2536 = vmatpush3.bf16.msra.mxu0 %v2777_v30  ;;  %v2807_v30 = vld [vmem:[%s3953_s5 + $0x228] sm:$0xff]  }
 0x1fb   :  { %2537 = vmatprep.subr.bf16.mxu0 %v2778_v31  ;;  %v2808_v31 = vld [vmem:[%s3953_s5 + $0x260] sm:$0xff]  }
 0x1fe   :  { %2538 = vmatpush3.bf16.msra.mxu0 %v2779_v32  ;;  %v2809_v32 = vld [vmem:[%s3953_s5 + $0x220] sm:$0xff]  }
 0x1ff   :  { %2539 = vmatprep.subr.bf16.mxu0 %v2780_v33  ;;  %v2810_v33 = vld [vmem:[%s3953_s5 + $0x258] sm:$0xff]  }
 0x202   :  { %2540 = vmatpush3.bf16.msra.mxu0 %v2781_v34  ;;  %v2811_v34 = vld [vmem:[%s3953_s5 + $0x218] sm:$0xff]  }
 0x203   :  { %2541 = vmatprep.subr.bf16.mxu0 %v2782_v35  ;;  %v2812_v35 = vld [vmem:[%s3953_s5 + $0x250] sm:$0xff]  }
 0x206   :  { %2542 = vmatpush3.bf16.msra.mxu0 %v2783_v36  ;;  %v2813_v36 = vld [vmem:[%s3953_s5 + $0x210] sm:$0xff]  }
 0x207   :  { %2543 = vmatprep.subr.bf16.mxu0 %v2784_v37  ;;  %v2814_v37 = vld [vmem:[%s3953_s5 + $0x248] sm:$0xff]  }
 0x20a   :  { %2544 = vmatpush3.bf16.msra.mxu0 %v2785_v38  ;;  %v2815_v38 = vld [vmem:[%s3953_s5 + $0x208] sm:$0xff]  }
 0x20b   :  { %2573 = vmatprep.subr.bf16.mxu0 %v2802_v40  ;;  %v2816_v40 = vld [vmem:[%s3953_s5 + $0x240] sm:$0xff]  }
 0x20d   :  { %v897_v42 = vpop.f32.mrf.mxu0 }
 0x20e   :  { %v898_v43 = vadd.f32 %v897_v42, %v3721_v28  ;;  %v2817_v42 = vld [vmem:[%s3953_s5 + $0x200] sm:$0xff]  }
 0x20f   :  { %v983_v44 = vpop.f32.mrf.mxu1  ;;  %v899_v45 = vpop.f32.mrf.mxu0 }
 0x210   :  { %v939_v46 = vadd.f32 %v3699_v63, %v898_v43  ;;  %v900_v47 = vadd.f32 %v899_v45, %v3683_v53  ;;  %v2790_v63 = vld [vmem:[%s3953_s5 + $0x1e8] sm:$0xff]   ;;  %v984_v11 = vadd.f32 %v983_v44, %v3721_v28 }
 0x211   :  { %v985_v48 = vpop.f32.mrf.mxu1  ;;  %v901_v49 = vpop.f32.mrf.mxu0 }
 0x212   :  { %v941_v50 = vadd.f32 %v3701_v3, %v900_v47  ;;  %v945_v51 = vmax.f32 %v939_v46, 0.0  ;;  %v2793_v3 = vld [vmem:[%s3953_s5 + $0x1a0] sm:$0xff]   ;;  %v986_v15 = vadd.f32 %v985_v48, %v3683_v53 }
 0x213   :  { %v987_v52 = vpop.f32.mrf.mxu1  ;;  %v902_v54 = vpop.f32.mrf.mxu0 }
 0x214   :  { %v946_v55 = vmax.f32 %v941_v50, 0.0  ;;  %v947_v60 = vpack.c.bf16 %v945_v51, %v945_v51 }
 0x215   :  { %v988_v56 = vpop.f32.mrf.mxu1 }
 0x216   :  { %v948_v57 = vpack.c.bf16 %v946_v55, %v946_v55 }
 0x218   :  { %1926 = vmatprep.mubr.bf16.mxu1 %v948_v57 }
 0x219   :  { %1927 = vmatmul.mubr.bf16.vlgmr.msra.gmra.mxu1 %v947_v60 }
 0x21a   :  { %2552 = vmatpush3.bf16.msra.mxu1 %v2787_v59 }
 0x21b   :  { %2553 = vmatprep.subr.bf16.mxu1 %v2788_v61 }
 0x21e   :  { %2554 = vmatpush3.bf16.msra.mxu1 %v2789_v62 }
 0x21f   :  { %2555 = vmatprep.subr.bf16.mxu1 %v2790_v63 }
 0x222   :  { %2556 = vmatpush3.bf16.msra.mxu1 %v2791_v1 }
 0x223   :  { %2557 = vmatprep.subr.bf16.mxu1 %v2792_v2 }
 0x226   :  { %2558 = vmatpush3.bf16.msra.mxu1 %v2793_v3 }
 0x227   :  { %2559 = vmatprep.subr.bf16.mxu1 %v2794_v4 }
 0x22a   :  { %2560 = vmatpush3.bf16.msra.mxu1 %v2795_v5 }
 0x22b   :  { %2561 = vmatprep.subr.bf16.mxu1 %v2796_v6 }
 0x22d   :  { %v1024_v9 = vpop.f32.mrf.mxu0 }
 0x22e   :  { %v1025_v19 = vadd.f32 %v1024_v9, %v984_v11  ;;  %2562 = vmatpush3.bf16.msra.mxu1 %v2797_v7 }
 0x22f   :  { %v1026_v21 = vpop.f32.mrf.mxu0  ;;  %v1110_v22 = vpop.f32.mrf.mxu1  ;;  %2563 = vmatprep.subr.bf16.mxu1 %v2798_v8 }
 0x230   :  { %v1027_v10 = vadd.f32 %v1026_v21, %v986_v15  ;;  %v1031_v41 = vmax.f32 %v1025_v19, 0.0 }
 0x231   :  { %v1028_v0 = vpop.f32.mrf.mxu0  ;;  %v1112_v12 = vpop.f32.mrf.mxu1 }
 0x232   :  { %v1032_v13 = vmax.f32 %v1027_v10, 0.0  ;;  %2564 = vmatpush3.bf16.msra.mxu1 %v2799_v20  ;;  %v1033_v24 = vpack.c.bf16 %v1031_v41, %v1031_v41  ;;  %v2067_v10 = vld [vmem:[%s3955_s7 + $0x60] sm:$0xff]  ;;  %v2066_v41 = vld [vmem:[%s3955_s7 + $0x58] sm:$0xff]  ;;  %v2065_v0 = vld [vmem:[%s3955_s7 + $0x50] sm:$0xff] }
 0x233   :  { %v1029_v14 = vpop.f32.mrf.mxu0  ;;  %v1114_v17 = vpop.f32.mrf.mxu1  ;;  %2565 = vmatprep.subr.bf16.mxu1 %v2800_v58  ;;  %v2068_v58 = vld [vmem:[%s3955_s7 + $0x68] sm:$0xff] }
 0x234   :  { %v1034_v18 = vpack.c.bf16 %v1032_v13, %v1032_v13  ;;  %v2063_v13 = vld [vmem:[%s3955_s7 + $0x40] sm:$0xff]  ;;  %v2061_v14 = vld [vmem:[%s3955_s7 + $0x30] sm:$0xff]  ;;  %v2060_v17 = vld [vmem:[%s3955_s7 + $0x28] sm:$0xff] }
 0x235   :  { %v1115_v25 = vpop.f32.mrf.mxu1 }
 0x236   :  { %1966 = vmatprep.mubr.bf16.mxu0 %v1034_v18  ;;  %2566 = vmatpush3.bf16.msra.mxu1 %v2801_v16  ;;  %v2062_v16 = vld [vmem:[%s3955_s7 + $0x38] sm:$0xff]  ;;  %v2059_v18 = vld [vmem:[%s3955_s7 + $0x20] sm:$0xff] }
 0x237   :  { %1967 = vmatmul.mubr.bf16.vlgmr.msra.gmra.mxu0 %v1033_v24  ;;  %v2058_v25 = vld [vmem:[%s3955_s7 + $0x18] sm:$0xff] }
 0x238   :  { %2574 = vmatpush3.bf16.msra.mxu0 %v2803_v23  ;;  %v2249_v23 = vld [vmem:[%s3956_s6] ss:$0 sm:$0xff] }
 0x239   :  { %2575 = vmatprep.subr.bf16.mxu0 %v2804_v26 }
 0x23c   :  { %2576 = vmatpush3.bf16.msra.mxu0 %v2805_v27  ;;  %v2057_v27 = vld [vmem:[%s3955_s7 + $0x10] sm:$0xff] }
 0x23d   :  { %2577 = vmatprep.subr.bf16.mxu0 %v2806_v29 }
 0x240   :  { %2578 = vmatpush3.bf16.msra.mxu0 %v2807_v30 }
 0x241   :  { %2579 = vmatprep.subr.bf16.mxu0 %v2808_v31 }
 0x244   :  { %2580 = vmatpush3.bf16.msra.mxu0 %v2809_v32  ;;  %v2056_v32 = vld [vmem:[%s3955_s7 + $0x8] sm:$0xff] }
 0x245   :  { %2581 = vmatprep.subr.bf16.mxu0 %v2810_v33 }
 0x248   :  { %2582 = vmatpush3.bf16.msra.mxu0 %v2811_v34  ;;  %v2055_v34 = vld [vmem:[%s3955_s7] sm:$0xff] }
 0x249   :  { %2583 = vmatprep.subr.bf16.mxu0 %v2812_v35 }
 0x24c   :  { %2584 = vmatpush3.bf16.msra.mxu0 %v2813_v36 }
 0x24d   :  { %2585 = vmatprep.subr.bf16.mxu0 %v2814_v37 }
 0x250   :  { %2586 = vmatpush3.bf16.msra.mxu0 %v2815_v38 }
 0x251   :  { %2587 = vmatprep.subr.bf16.mxu0 %v2816_v40 }
 0x254   :  { %2588 = vmatpush3.bf16.msra.mxu0 %v2817_v42 }
 0x26d   :  { %v1069_v43 = vpop.f32.mrf.mxu0 }
 0x26e   :  { %v1070_v44 = vadd.f32 %v1069_v43, %v3721_v28 }
 0x26f   :  { %v1155_v45 = vpop.f32.mrf.mxu1  ;;  %v1071_v46 = vpop.f32.mrf.mxu0 }
 0x270   :  { %v1111_v47 = vadd.f32 %v1110_v22, %v1070_v44  ;;  %v1072_v48 = vadd.f32 %v1071_v46, %v3683_v53  ;;  %v1156_v61 = vadd.f32 %v1155_v45, %v3721_v28  ;;  %v2819_v28 = vmov 0.0   ;;  %v2069_v22 = vld [vmem:[%s3955_s7 + $0x70] sm:$0xff] }
 0x271   :  { %v1157_v49 = vpop.f32.mrf.mxu1  ;;  %v1073_v50 = vpop.f32.mrf.mxu0  ;;  %2612 = vmatprep.subr.mxu1 %v2819_v28 }
 0x272   :  { %v1113_v51 = vadd.f32 %v1112_v12, %v1072_v48  ;;  %v1117_v52 = vmax.f32 %v1111_v47, 0.0  ;;  %v1158_v63 = vadd.f32 %v1157_v49, %v3683_v53  ;;  %v2070_v53 = vld [vmem:[%s3955_s7 + $0x78] sm:$0xff]  ;;  %v2064_v12 = vld [vmem:[%s3955_s7 + $0x48] sm:$0xff] }
 0x273   :  { %v1159_v54 = vpop.f32.mrf.mxu1  ;;  %v1074_v55 = vpop.f32.mrf.mxu0 }
 0x274   :  { %v1118_v56 = vmax.f32 %v1113_v51, 0.0  ;;  %v1119_v60 = vpack.c.bf16 %v1117_v52, %v1117_v52 }
 0x275   :  { %v1160_v57 = vpop.f32.mrf.mxu1 }
 0x276   :  { %v1120_v59 = vpack.c.bf16 %v1118_v56, %v1118_v56 }
 0x278   :  { %2006 = vmatprep.mubr.bf16.mxu1 %v1120_v59  ;;  %v2330_v59 = vld [vmem:[%s3957_s8] ss:$0 sm:$0xff] }
 0x279   :  { %2007 = vmatmul.mubr.bf16.vlgmr.msra.gmra.mxu1 %v1119_v60 }
 0x27a   :  { %2613 = vmatpush3.msra.mxu1 %v2070_v53  ;;  %2644 = vmatprep.mubr.msk.f32.mxu1 %vm2820_vm0, %v2819_v28 }
 0x27b   :  { %2614 = vmatprep.subr.mxu1 %v2819_v28 }
 0x27c   :  { %2615 = vmatpush3.msra.mxu1 %v2069_v22 }
 0x27d   :  { %2616 = vmatprep.subr.mxu1 %v2819_v28 }
 0x27e   :  { %2617 = vmatpush3.msra.mxu1 %v2068_v58 }
 0x27f   :  { %2618 = vmatprep.subr.mxu1 %v2819_v28 }
 0x280   :  { %2619 = vmatpush3.msra.mxu1 %v2067_v10 }
 0x281   :  { %2620 = vmatprep.subr.mxu1 %v2819_v28 }
 0x282   :  { %2621 = vmatpush3.msra.mxu1 %v2066_v41 }
 0x283   :  { %2622 = vmatprep.subr.mxu1 %v2819_v28 }
 0x284   :  { %2623 = vmatpush3.msra.mxu1 %v2065_v0 }
 0x285   :  { %2624 = vmatprep.subr.mxu1 %v2819_v28 }
 0x286   :  { %2625 = vmatpush3.msra.mxu1 %v2064_v12 }
 0x287   :  { %2626 = vmatprep.subr.mxu1 %v2819_v28 }
 0x288   :  { %2627 = vmatpush3.msra.mxu1 %v2063_v13 }
 0x289   :  { %2628 = vmatprep.subr.mxu1 %v2819_v28 }
 0x28a   :  { %2629 = vmatpush3.msra.mxu1 %v2062_v16 }
 0x28b   :  { %2630 = vmatprep.subr.mxu1 %v2819_v28 }
 0x28c   :  { %2631 = vmatpush3.msra.mxu1 %v2061_v14 }
 0x28d   :  { %v1196_v62 = vpop.f32.mrf.mxu0  ;;  %2632 = vmatprep.subr.mxu1 %v2819_v28 }
 0x28e   :  { %v1197_v1 = vadd.f32 %v1196_v62, %v1156_v61  ;;  %2633 = vmatpush3.msra.mxu1 %v2060_v17 }
 0x28f   :  { %v1198_v2 = vpop.f32.mrf.mxu0  ;;  %2634 = vmatprep.subr.mxu1 %v2819_v28 }
 0x290   :  { %v1199_v3 = vadd.f32 %v1198_v2, %v1158_v63  ;;  %v1203_v4 = vmax.f32 %v1197_v1, 0.0  ;;  %2635 = vmatpush3.msra.mxu1 %v2059_v18  ;;  %v2153_v1 = vand.u32 127, %v527_v39 }
 0x291   :  { %v1200_v5 = vpop.f32.mrf.mxu0  ;;  %2636 = vmatprep.subr.mxu1 %v2819_v28 }
 0x292   :  { %v1204_v6 = vmax.f32 %v1199_v3, 0.0  ;;  %v1205_v11 = vpack.c.bf16 %v1203_v4, %v1203_v4  ;;  %2637 = vmatpush3.msra.mxu1 %v2058_v25 }
 0x293   :  { %v1201_v7 = vpop.f32.mrf.mxu0  ;;  %2638 = vmatprep.subr.mxu1 %v2819_v28 }
 0x294   :  { %v1206_v8 = vpack.c.bf16 %v1204_v6, %v1204_v6  ;;  %2639 = vmatpush3.msra.mxu1 %v2057_v27 }
 0x295   :  { %2640 = vmatprep.subr.mxu1 %v2819_v28 }
 0x296   :  { %2046 = vmatprep.mubr.bf16.mxu0 %v1206_v8  ;;  %2641 = vmatpush3.msra.mxu1 %v2056_v32 }
 0x297   :  { %2047 = vmatmul.mubr.bf16.vlgmr.msra.gmra.mxu0 %v1205_v11  ;;  %2642 = vmatprep.subr.mxu1 %v2819_v28 }
 0x298   :  { %2643 = vmatpush3.msra.mxu1 %v2055_v34 }
 0x2ad   :  { %v2501_v9 = vpop.f32.mrf.mxu0 }
 0x2af   :  { %v2502_v15 = vpop.f32.mrf.mxu0 }
 0x2b0   :  { %v2503_v19 = vadd.f32 %v2502_v15, %v2501_v9 }
 0x2b1   :  { %v2504_v20 = vpop.f32.mrf.mxu0 }
 0x2b2   :  { %v1889_v29 = vadd.f32 %v2503_v19, %v2249_v23 }
 0x2b3   :  { %v2505_v21 = vpop.f32.mrf.mxu0 }
 0x2d9   :  { %v2523_v24 = vpop.f32.mrf.mxu1 }
 0x2db   :  { %v2524_v26 = vpop.f32.mrf.mxu1 }
 0x2dc   :  { %v2525_v30 = vadd.f32 %v2524_v26, %v2523_v24 }
 0x2dd   :  { %v2526_v31 = vpop.f32.mrf.mxu1 }
 0x2de   :  { %v1929_v33 = vadd.f32 %v2525_v30, %v1889_v29 }
 0x2df   :  { %v2527_v35 = vpop.f32.mrf.mxu1 }
 0x2f7   :  { %v2545_v36 = vpop.f32.mrf.mxu0 }
 0x2f9   :  { %v2546_v37 = vpop.f32.mrf.mxu0 }
 0x2fa   :  { %v2547_v38 = vadd.f32 %v2546_v37, %v2545_v36 }
 0x2fb   :  { %v2548_v40 = vpop.f32.mrf.mxu0 }
 0x2fc   :  { %v1969_v42 = vadd.f32 %v2547_v38, %v1929_v33 }
 0x2fd   :  { %v2549_v43 = vpop.f32.mrf.mxu0 }
 0x339   :  { %v2567_v44 = vpop.f32.mrf.mxu1 }
 0x33b   :  { %v2568_v45 = vpop.f32.mrf.mxu1 }
 0x33c   :  { %v2569_v48 = vadd.f32 %v2568_v45, %v2567_v44 }
 0x33d   :  { %v2570_v46 = vpop.f32.mrf.mxu1 }
 0x33e   :  { %v2009_v51 = vadd.f32 %v2569_v48, %v1969_v42 }
 0x33f   :  { %v2571_v47 = vpop.f32.mrf.mxu1 }
 0x357   :  { %v2589_v49 = vpop.f32.mrf.mxu0 }
 0x359   :  { %v2590_v50 = vpop.f32.mrf.mxu0 }
 0x35a   :  { %v2591_v52 = vadd.f32 %v2590_v50, %v2589_v49 }
 0x35b   :  { %v2592_v54 = vpop.f32.mrf.mxu0 }
 0x35c   :  { %v2049_v55 = vadd.f32 %v2591_v52, %v2009_v51 }
 0x35d   :  { %v2593_v56 = vpop.f32.mrf.mxu0 }
 0x35e   :  { %v2054_v57 = vmax.f32 %v2049_v55, 0.0 }
 0x360   :  { %2645 = vmatmul.mubr.f32.vlgmr.msra.gmra.mxu1 %v2054_v57 }
 0x420   :  { %v2144_v60 = vpop.f32.mrf.mxu1 }
 0x421   :  { %v2145_v61 = vadd.f32 %v2330_v59, %v2144_v60 }
 0x422   :  { %v2646_v62 = vpop.f32.mrf.mxu1 }
 0x423   :  { %v2149_v63 = vsel %vm2148_vm1, %v2145_v61, -inf }
 0x424   :  { %2150 = vmax.xlane.f32.xlu0 %v2149_v63 }
 0x4ad   :  { %v2151_v2 = vpop.xlane.xlu0 %2150 }
 0x4ae   :  { %vm2154_vm2 = vcmp.eq.f32.partialorder %v2145_v61, %v2151_v2 }
 0x4af   :  { %v2155_v3 = vsel %vm2154_vm2, %v2153_v1, 6 }
 0x4b0   :  { %v2156_v4 = vsel %vm2148_vm1, %v2155_v3, 2147483647 }
 0x4b1   :  { %v2158_v5 = vshra.s32 %v2156_v4, 16  ;;  %v2157_v7 = vand.u32 65535, %v2156_v4 }
 0x4b3   :  { %v2160_v6 = vcvt.s32.f32 %v2158_v5  ;;  %v2159_v11 = vcvt.s32.f32 %v2157_v7 }
 0x4b5   :  { %2161 = vmin.xlane.f32.xlu0 %v2160_v6 }
 0x53e   :  { %v2162_v8 = vpop.xlane.xlu0 %2161 }
 0x53f   :  { %vm2163_vm3 = vcmp.eq.f32.partialorder %v2160_v6, %v2162_v8  ;;  %v2168_v15 = vcvt.f32.s32 %v2162_v8 }
 0x540   :  { %v2164_v9 = vsel %vm2163_vm3, %v2159_v11, inf }
 0x541   :  { %2165 = vmin.xlane.f32.xlu1 %v2164_v9  ;;  %v2169_v20 = vshll.u32 %v2168_v15, 16 }
 0x5ca   :  { %v2166_v19 = vpop.xlane.xlu1 %2165 }
 0x5cb   :  { %v2167_v21 = vcvt.f32.s32 %v2166_v19 }
 0x5cd   :  { %v2170_v28 = vadd.s32 %v2169_v20, %v2167_v21 }
 0x5cf   :  { %2172 = vst.msk [vmem:[%s3958_s9] sm:$0xff] %vm2171_vm4, %v2170_v28 }

</bundles_post_ra>
